<compile_context>
chip_gen: v6e
topology: v6e:2x2x1
jax: 0.10.0
libtpu: 0.0.40
codegen_flags: <defaults>
</compile_context>

<pallas_src>
import functools

import jax
import jax.numpy as jnp
from jax.experimental import pallas as pl
from jax.experimental.pallas import tpu as pltpu


# Fixed by the PyTorch module; baked in as compile-time constants (must be increasing).
BUCKETS = (1, 2, 3, 4, 5, 8, 16, 32, 64)


def _distance_embed_kernel(len_ref, emb_ref, out_ref, *, buckets):
    """One (TN, D) output tile: out[n, :] = emb[sum(len[n] >= buckets), :].

    len_ref : (TN, 1) int32   distances for this tile (one per output row)
    emb_ref : (V, D)  float32 full embedding table (constant block, not re-DMA'd)
    out_ref : (TN, D) float32
    """
    lengths = len_ref[...]                       # (TN, 1) int32
    emb = emb_ref[...]                           # (V, D)  float32
    tn, d = out_ref.shape

    # Hoisted int32 lane-broadcast of the distances (done once per tile); every
    # remaining op is a compare+select staircase -- no idx build, no per-bucket
    # hand-materialized fat broadcasts.  Pure selects => bit-exact table values.
    len_b = jnp.broadcast_to(lengths, (tn, d))   # (TN, D)

    acc = jnp.broadcast_to(emb[0:1, :], (tn, d))  # bucket-0 baseline
    for k, b in enumerate(buckets):               # thresholds in increasing order
        acc = jnp.where(len_b >= b, emb[k + 1:k + 2, :], acc)

    out_ref[...] = acc.astype(out_ref.dtype)


def _round_up(x, m):
    return ((x + m - 1) // m) * m


def distance_embed(lengths, emb_table, *, buckets=BUCKETS, tn=8192):
    """lengths: (N,) int; emb_table: (V, D) f32 -> (N, D) f32 == emb_table[bucketize(lengths)]."""
    n = int(lengths.shape[0])
    v, d = emb_table.shape
    assert v == len(buckets) + 1
    assert list(buckets) == sorted(buckets), "staircase requires increasing thresholds"

    # Clamp the tile to the problem size (padded rows are pure waste) but keep it big
    # enough to amortize the ~0.35 us per-grid-step overhead, and sublane-friendly.
    tn = max(512, min(tn, _round_up(n, 128)))
    n_tiles = pl.cdiv(n, tn)
    # v7x megacore: a single huge tile would leave one TensorCore idle; split large
    # single-tile problems in two (no-op for small N, harmless on 1-TC chips).
    if n_tiles == 1 and n > 1024:
        tn = max(512, _round_up(pl.cdiv(n, 2), 128))
        n_tiles = pl.cdiv(n, tn)
    n_pad = n_tiles * tn

    # Padded rows get length 0 -> bucket 0; they are sliced off below.
    lengths_col = jnp.zeros((n_pad, 1), jnp.int32).at[:n, 0].set(
        lengths.astype(jnp.int32))
    emb = emb_table.astype(jnp.float32)

    # VMEM budget: both the (tn, 1) int32 and (tn, d) f32 blocks are lane-padded to 128
    # lanes in VMEM (tn * 512 bytes each); double-buffered, plus select temporaries.
    # Keep the limit well under v7x's 64 MiB physical VMEM while bumping v5e's ~16 MiB
    # default scoped limit.
    per_block = tn * 128 * 4
    vmem_limit = int(min(48 * 1024 * 1024,
                         max(32 * 1024 * 1024, 8 * 1024 * 1024 + 8 * per_block)))

    kernel = functools.partial(_distance_embed_kernel, buckets=tuple(buckets))

    out = pl.pallas_call(
        kernel,
        out_shape=jax.ShapeDtypeStruct((n_pad, d), jnp.float32),
        grid=(n_tiles,),
        in_specs=[
            pl.BlockSpec((tn, 1), lambda i: (i, 0)),   # per-row distances
            pl.BlockSpec((v, d), lambda i: (0, 0)),    # table: constant block index
        ],
        out_specs=pl.BlockSpec((tn, d), lambda i: (i, 0)),  # PyTorch (N, D) layout
        compiler_params=pltpu.CompilerParams(
            dimension_semantics=("parallel",),          # shard tiles across TCs (v7x)
            vmem_limit_bytes=vmem_limit,
        ),
    )(lengths_col, emb)

    # Padded rows (bucket 0) sliced off; no transpose needed anymore.
    return out[:n]


def _reference(lengths, emb_table, buckets):
    idx = jnp.sum(lengths[:, None] >= jnp.asarray(buckets, jnp.int32)[None, :], axis=1)
    return emb_table[idx]


if __name__ == "__main__":
    key = jax.random.PRNGKey(0)
    k_emb, k_len1, k_len2 = jax.random.split(key, 3)

    dimension = 20
    vocab = len(BUCKETS) + 1  # 10

    # Deterministic "nn.Embedding" weights (torch default init ~ N(0, 1)).
    emb_table = jax.random.normal(k_emb, (vocab, dimension), dtype=jnp.float32)

    # Small case, module-scale: 8 integer distances (span widths / mention distances).
    lengths_small = jax.random.randint(k_len1, (8,), 0, 100, dtype=jnp.int32)
    out_small = jax.block_until_ready(distance_embed(lengths_small, emb_table))
    ref_small = _reference(lengths_small, emb_table, BUCKETS)
    assert out_small.shape == (8, dimension)
    assert jnp.array_equal(out_small, ref_small), "small-case mismatch vs reference"

    # Larger case: exercises tile clamping, the 2-tile split and row padding.
    lengths_big = jax.random.randint(k_len2, (3000,), 0, 200, dtype=jnp.int32)
    out_big = jax.block_until_ready(distance_embed(lengths_big, emb_table))
    ref_big = _reference(lengths_big, emb_table, BUCKETS)
    assert out_big.shape == (3000, dimension)
    assert jnp.array_equal(out_big, ref_big), "large-case mismatch vs reference"

    print("KERNEL_OK")
</pallas_src>

<mosaic_0001>
module attributes {stable_mosaic.version = 11 : i64} {
  func.func @_distance_embed_kernel(%arg0: i32, %arg1: memref<512x1xi32, #tpu.memory_space<vmem>>, %arg2: memref<10x20xf32, #tpu.memory_space<vmem>>, %arg3: memref<512x20xf32, #tpu.memory_space<vmem>>) attributes {dimension_semantics = [#tpu.dimension_semantics<parallel>], iteration_bounds = array<i64: 1>, scalar_prefetch = 0 : i64, scratch_operands = 0 : i64, tpu.core_type = #tpu.core_type<tc>, window_params = [{transform_indices = @transform_0, window_bounds = array<i64: 512, 1>}, {pipeline_mode = #tpu.pipeline_mode<synchronous>, transform_indices = @transform_1, window_bounds = array<i64: 10, 20>}, {transform_indices = @transform_2, window_bounds = array<i64: 512, 20>}]} {
    %c0 = arith.constant 0 : index
    %c0_0 = arith.constant 0 : index
    %0 = vector.load %arg1[%c0, %c0_0] : memref<512x1xi32, #tpu.memory_space<vmem>>, vector<512x1xi32>
    %c0_1 = arith.constant 0 : index
    %c0_2 = arith.constant 0 : index
    %1 = vector.load %arg2[%c0_1, %c0_2] : memref<10x20xf32, #tpu.memory_space<vmem>>, vector<10x20xf32>
    %2 = vector.shape_cast %0 : vector<512x1xi32> to vector<512x1xi32>
    %3 = vector.broadcast %2 : vector<512x1xi32> to vector<512x20xi32>
    %4 = vector.extract_strided_slice %1 {offsets = [0, 0], sizes = [1, 20], strides = [1, 1]} : vector<10x20xf32> to vector<1x20xf32>
    %5 = vector.shape_cast %4 : vector<1x20xf32> to vector<1x20xf32>
    %6 = vector.broadcast %5 : vector<1x20xf32> to vector<512x20xf32>
    %c1_i32 = arith.constant 1 : i32
    %7 = vector.broadcast %c1_i32 : i32 to vector<512x20xi32>
    %8 = arith.cmpi sge, %3, %7 : vector<512x20xi32>
    %9 = vector.extract_strided_slice %1 {offsets = [1, 0], sizes = [1, 20], strides = [1, 1]} : vector<10x20xf32> to vector<1x20xf32>
    %10 = vector.shape_cast %9 : vector<1x20xf32> to vector<1x20xf32>
    %11 = vector.broadcast %10 : vector<1x20xf32> to vector<512x20xf32>
    %12 = arith.select %8, %11, %6 : vector<512x20xi1>, vector<512x20xf32>
    %c2_i32 = arith.constant 2 : i32
    %13 = vector.broadcast %c2_i32 : i32 to vector<512x20xi32>
    %14 = arith.cmpi sge, %3, %13 : vector<512x20xi32>
    %15 = vector.extract_strided_slice %1 {offsets = [2, 0], sizes = [1, 20], strides = [1, 1]} : vector<10x20xf32> to vector<1x20xf32>
    %16 = vector.shape_cast %15 : vector<1x20xf32> to vector<1x20xf32>
    %17 = vector.broadcast %16 : vector<1x20xf32> to vector<512x20xf32>
    %18 = arith.select %14, %17, %12 : vector<512x20xi1>, vector<512x20xf32>
    %c3_i32 = arith.constant 3 : i32
    %19 = vector.broadcast %c3_i32 : i32 to vector<512x20xi32>
    %20 = arith.cmpi sge, %3, %19 : vector<512x20xi32>
    %21 = vector.extract_strided_slice %1 {offsets = [3, 0], sizes = [1, 20], strides = [1, 1]} : vector<10x20xf32> to vector<1x20xf32>
    %22 = vector.shape_cast %21 : vector<1x20xf32> to vector<1x20xf32>
    %23 = vector.broadcast %22 : vector<1x20xf32> to vector<512x20xf32>
    %24 = arith.select %20, %23, %18 : vector<512x20xi1>, vector<512x20xf32>
    %c4_i32 = arith.constant 4 : i32
    %25 = vector.broadcast %c4_i32 : i32 to vector<512x20xi32>
    %26 = arith.cmpi sge, %3, %25 : vector<512x20xi32>
    %27 = vector.extract_strided_slice %1 {offsets = [4, 0], sizes = [1, 20], strides = [1, 1]} : vector<10x20xf32> to vector<1x20xf32>
    %28 = vector.shape_cast %27 : vector<1x20xf32> to vector<1x20xf32>
    %29 = vector.broadcast %28 : vector<1x20xf32> to vector<512x20xf32>
    %30 = arith.select %26, %29, %24 : vector<512x20xi1>, vector<512x20xf32>
    %c5_i32 = arith.constant 5 : i32
    %31 = vector.broadcast %c5_i32 : i32 to vector<512x20xi32>
    %32 = arith.cmpi sge, %3, %31 : vector<512x20xi32>
    %33 = vector.extract_strided_slice %1 {offsets = [5, 0], sizes = [1, 20], strides = [1, 1]} : vector<10x20xf32> to vector<1x20xf32>
    %34 = vector.shape_cast %33 : vector<1x20xf32> to vector<1x20xf32>
    %35 = vector.broadcast %34 : vector<1x20xf32> to vector<512x20xf32>
    %36 = arith.select %32, %35, %30 : vector<512x20xi1>, vector<512x20xf32>
    %c8_i32 = arith.constant 8 : i32
    %37 = vector.broadcast %c8_i32 : i32 to vector<512x20xi32>
    %38 = arith.cmpi sge, %3, %37 : vector<512x20xi32>
    %39 = vector.extract_strided_slice %1 {offsets = [6, 0], sizes = [1, 20], strides = [1, 1]} : vector<10x20xf32> to vector<1x20xf32>
    %40 = vector.shape_cast %39 : vector<1x20xf32> to vector<1x20xf32>
    %41 = vector.broadcast %40 : vector<1x20xf32> to vector<512x20xf32>
    %42 = arith.select %38, %41, %36 : vector<512x20xi1>, vector<512x20xf32>
    %c16_i32 = arith.constant 16 : i32
    %43 = vector.broadcast %c16_i32 : i32 to vector<512x20xi32>
    %44 = arith.cmpi sge, %3, %43 : vector<512x20xi32>
    %45 = vector.extract_strided_slice %1 {offsets = [7, 0], sizes = [1, 20], strides = [1, 1]} : vector<10x20xf32> to vector<1x20xf32>
    %46 = vector.shape_cast %45 : vector<1x20xf32> to vector<1x20xf32>
    %47 = vector.broadcast %46 : vector<1x20xf32> to vector<512x20xf32>
    %48 = arith.select %44, %47, %42 : vector<512x20xi1>, vector<512x20xf32>
    %c32_i32 = arith.constant 32 : i32
    %49 = vector.broadcast %c32_i32 : i32 to vector<512x20xi32>
    %50 = arith.cmpi sge, %3, %49 : vector<512x20xi32>
    %51 = vector.extract_strided_slice %1 {offsets = [8, 0], sizes = [1, 20], strides = [1, 1]} : vector<10x20xf32> to vector<1x20xf32>
    %52 = vector.shape_cast %51 : vector<1x20xf32> to vector<1x20xf32>
    %53 = vector.broadcast %52 : vector<1x20xf32> to vector<512x20xf32>
    %54 = arith.select %50, %53, %48 : vector<512x20xi1>, vector<512x20xf32>
    %c64_i32 = arith.constant 64 : i32
    %55 = vector.broadcast %c64_i32 : i32 to vector<512x20xi32>
    %56 = arith.cmpi sge, %3, %55 : vector<512x20xi32>
    %57 = vector.extract_strided_slice %1 {offsets = [9, 0], sizes = [1, 20], strides = [1, 1]} : vector<10x20xf32> to vector<1x20xf32>
    %58 = vector.shape_cast %57 : vector<1x20xf32> to vector<1x20xf32>
    %59 = vector.broadcast %58 : vector<1x20xf32> to vector<512x20xf32>
    %60 = arith.select %56, %59, %54 : vector<512x20xi1>, vector<512x20xf32>
    %c0_3 = arith.constant 0 : index
    %c0_4 = arith.constant 0 : index
    %61 = vector.load %arg3[%c0_3, %c0_4] : memref<512x20xf32, #tpu.memory_space<vmem>>, vector<512x20xf32>
    tpu.vector_store %arg3[%c0_3, %c0_4], %60 {strides = array<i32>} : memref<512x20xf32, #tpu.memory_space<vmem>>, vector<512x20xf32>,
    return
  }
  func.func @transform_0(%arg0: i32) -> (i32, i32) {
    %c0_i32 = arith.constant 0 : i32
    %c0_i32_0 = arith.constant 0 : i32
    return %arg0, %c0_i32 : i32, i32
  }
  func.func @transform_1(%arg0: i32) -> (i32, i32) {
    %c0_i32 = arith.constant 0 : i32
    %c0_i32_0 = arith.constant 0 : i32
    %c0_i32_1 = arith.constant 0 : i32
    return %c0_i32, %c0_i32_0 : i32, i32
  }
  func.func @transform_2(%arg0: i32) -> (i32, i32) {
    %c0_i32 = arith.constant 0 : i32
    %c0_i32_0 = arith.constant 0 : i32
    return %arg0, %c0_i32 : i32, i32
  }
}

</mosaic_0001>

<bundles_post_ra>
// kernel: tpu_custom_call.1
= control target key start
LH: loop header
LB: loop body
LE: loop exit
PB: predicated region body
PF: predicated region fallthrough
CT: control target
= control target key end

     0   :  { %v1533_v0 = vmov 0   ;;  %v269_v59 = vlaneseq  ;;  %vm1461_vm0 = vcmask 162816   ;;  %s2667_s0 = inlined_call_operand.vmem [shape: s32[512,1], index: 0, kind: input, shape index: {}]   ;;  %s2668_s1 = inlined_call_operand.vmem [shape: f32[10,20], index: 1, kind: input, shape index: {}]   ;;  %s2669_s2 = inlined_call_operand.vmem [shape: f32[512,20], index: 2, kind: output, shape index: {}]  }
   0x1   :  { %1532 = vset.pattern.permute.xlu1 %v1533_v0  ;;  %1531 = vset.pattern.permute.xlu0 %v1533_v0  ;;  %v13_v1 = vld [vmem:[%s2667_s0 + $0x10] sm:$0xff]  ;;  %v11_v2 = vld [vmem:[%s2667_s0] sm:$0xff]  ;;  %v14_v3 = vld [vmem:[%s2667_s0 + $0x18] sm:$0xff] }
   0x2   :  { %84 = vperm.xlu1 %1532, %v13_v1   ;;  %78 = vperm.xlu0 %1531, %v11_v2   ;;  %v12_v4 = vld [vmem:[%s2667_s0 + $0x8] sm:$0xff]  ;;  %v15_v6 = vld [vmem:[%s2667_s0 + $0x20] sm:$0xff]  ;;  %v18_v7 = vld [vmem:[%s2667_s0 + $0x38] sm:$0xff]  ;;  %v270_v62 = vshrl.u32 %v269_v59, 7 }
   0x3   :  { %v16_v5 = vld [vmem:[%s2667_s0 + $0x28] sm:$0xff]  ;;  %v17_v8 = vld [vmem:[%s2667_s0 + $0x30] sm:$0xff]  ;;  %v19_v10 = vld [vmem:[%s2667_s0 + $0x40] sm:$0xff] }
   0x4   :  { %v20_v9 = vld [vmem:[%s2667_s0 + $0x48] sm:$0xff]  ;;  %v22_v11 = vld [vmem:[%s2667_s0 + $0x58] sm:$0xff]  ;;  %v21_v12 = vld [vmem:[%s2667_s0 + $0x50] sm:$0xff]  ;;  %v271_v1 = vsub.s32 0, %v270_v62  ;;  %v339_v2 = vsub.s32 1, %v270_v62 }
   0x5   :  { %v24_v13 = vld [vmem:[%s2667_s0 + $0x68] sm:$0xff]  ;;  %v23_v14 = vld [vmem:[%s2667_s0 + $0x60] sm:$0xff]  ;;  %v26_v15 = vld [vmem:[%s2667_s0 + $0x78] sm:$0xff] }
   0x6   :  { %87 = vperm.xlu1 %1532, %v14_v3   ;;  %81 = vperm.xlu0 %1531, %v12_v4   ;;  %v25_v16 = vld [vmem:[%s2667_s0 + $0x70] sm:$0xff]  ;;  %v28_v17 = vld [vmem:[%s2667_s0 + $0x88] sm:$0xff]  ;;  %v27_v18 = vld [vmem:[%s2667_s0 + $0x80] sm:$0xff]  ;;  %v471_v4 = vsub.s32 2, %v270_v62 }
   0x7   :  { %v30_v19 = vld [vmem:[%s2667_s0 + $0x98] sm:$0xff]  ;;  %v29_v20 = vld [vmem:[%s2667_s0 + $0x90] sm:$0xff]  ;;  %v32_v21 = vld [vmem:[%s2667_s0 + $0xa8] sm:$0xff] }
   0x8   :  { %v31_v22 = vld [vmem:[%s2667_s0 + $0xa0] sm:$0xff]  ;;  %v34_v23 = vld [vmem:[%s2667_s0 + $0xb8] sm:$0xff]  ;;  %v33_v24 = vld [vmem:[%s2667_s0 + $0xb0] sm:$0xff] }
   0x9   :  { %v36_v25 = vld [vmem:[%s2667_s0 + $0xc8] sm:$0xff]  ;;  %v35_v26 = vld [vmem:[%s2667_s0 + $0xc0] sm:$0xff]  ;;  %v38_v27 = vld [vmem:[%s2667_s0 + $0xd8] sm:$0xff] }
   0xa   :  { %93 = vperm.xlu1 %1532, %v16_v5   ;;  %90 = vperm.xlu0 %1531, %v15_v6   ;;  %v37_v28 = vld [vmem:[%s2667_s0 + $0xd0] sm:$0xff]  ;;  %v40_v29 = vld [vmem:[%s2667_s0 + $0xe8] sm:$0xff]  ;;  %v39_v30 = vld [vmem:[%s2667_s0 + $0xe0] sm:$0xff]  ;;  %v603_v5 = vsub.s32 3, %v270_v62  ;;  %v735_v6 = vsub.s32 4, %v270_v62 }
   0xb   :  { %v42_v31 = vld [vmem:[%s2667_s0 + $0xf8] sm:$0xff]  ;;  %v41_v32 = vld [vmem:[%s2667_s0 + $0xf0] sm:$0xff]  ;;  %v44_v33 = vld [vmem:[%s2667_s0 + $0x108] sm:$0xff] }
   0xc   :  { %v43_v34 = vld [vmem:[%s2667_s0 + $0x100] sm:$0xff]  ;;  %v46_v35 = vld [vmem:[%s2667_s0 + $0x118] sm:$0xff]  ;;  %v45_v36 = vld [vmem:[%s2667_s0 + $0x110] sm:$0xff] }
   0xd   :  { %v48_v37 = vld [vmem:[%s2667_s0 + $0x128] sm:$0xff]  ;;  %v47_v38 = vld [vmem:[%s2667_s0 + $0x120] sm:$0xff]  ;;  %v50_v39 = vld [vmem:[%s2667_s0 + $0x138] sm:$0xff] }
   0xe   :  { %99 = vperm.xlu1 %1532, %v18_v7   ;;  %96 = vperm.xlu0 %1531, %v17_v8   ;;  %v49_v40 = vld [vmem:[%s2667_s0 + $0x130] sm:$0xff]  ;;  %v52_v41 = vld [vmem:[%s2667_s0 + $0x148] sm:$0xff]  ;;  %v51_v42 = vld [vmem:[%s2667_s0 + $0x140] sm:$0xff]  ;;  %v867_v7 = vsub.s32 5, %v270_v62  ;;  %v999_v8 = vsub.s32 6, %v270_v62 }
   0xf   :  { %v54_v43 = vld [vmem:[%s2667_s0 + $0x158] sm:$0xff]  ;;  %v53_v44 = vld [vmem:[%s2667_s0 + $0x150] sm:$0xff]  ;;  %v56_v45 = vld [vmem:[%s2667_s0 + $0x168] sm:$0xff] }
  0x10   :  { %v55_v46 = vld [vmem:[%s2667_s0 + $0x160] sm:$0xff]  ;;  %v58_v47 = vld [vmem:[%s2667_s0 + $0x178] sm:$0xff]  ;;  %v57_v48 = vld [vmem:[%s2667_s0 + $0x170] sm:$0xff] }
  0x11   :  { %v60_v49 = vld [vmem:[%s2667_s0 + $0x188] sm:$0xff]  ;;  %v59_v50 = vld [vmem:[%s2667_s0 + $0x180] sm:$0xff]  ;;  %v62_v51 = vld [vmem:[%s2667_s0 + $0x198] sm:$0xff] }
  0x12   :  { %105 = vperm.xlu1 %1532, %v20_v9   ;;  %102 = vperm.xlu0 %1531, %v19_v10   ;;  %v61_v52 = vld [vmem:[%s2667_s0 + $0x190] sm:$0xff]  ;;  %v64_v53 = vld [vmem:[%s2667_s0 + $0x1a8] sm:$0xff]  ;;  %v63_v54 = vld [vmem:[%s2667_s0 + $0x1a0] sm:$0xff]  ;;  %v1131_v9 = vsub.s32 7, %v270_v62 }
  0x13   :  { %v66_v55 = vld [vmem:[%s2667_s0 + $0x1b8] sm:$0xff]  ;;  %v65_v56 = vld [vmem:[%s2667_s0 + $0x1b0] sm:$0xff]  ;;  %v68_v57 = vld [vmem:[%s2667_s0 + $0x1c8] sm:$0xff] }
  0x14   :  { %v67_v58 = vld [vmem:[%s2667_s0 + $0x1c0] sm:$0xff]  ;;  %v70_v60 = vld [vmem:[%s2667_s0 + $0x1d8] sm:$0xff]  ;;  %v69_v61 = vld [vmem:[%s2667_s0 + $0x1d0] sm:$0xff] }
  0x15   :  { %v72_v63 = vld [vmem:[%s2667_s0 + $0x1e8] sm:$0xff]  ;;  %v71_v0 = vld [vmem:[%s2667_s0 + $0x1e0] sm:$0xff] }
  0x16   :  { %111 = vperm.xlu1 %1532, %v22_v11   ;;  %108 = vperm.xlu0 %1531, %v21_v12   ;;  %v75_v3 = vld [vmem:[%s2668_s1] sm:$0xff]  ;;  %v76_v10 = vld [vmem:[%s2668_s1 + $0x8] sm:$0x3] }
  0x17   :  { %v1741_v11 = vrot.slane %v75_v3, %v271_v1  ;;  %v1743_v12 = vrot.slane %v75_v3, %v339_v2 }
  0x1a   :  { %117 = vperm.xlu1 %1532, %v24_v13   ;;  %114 = vperm.xlu0 %1531, %v23_v14   ;;  %v74_v13 = vld [vmem:[%s2667_s0 + $0x1f8] sm:$0xff]  ;;  %v73_v14 = vld [vmem:[%s2667_s0 + $0x1f0] sm:$0xff] }
  0x1e   :  { %123 = vperm.xlu1 %1532, %v26_v15   ;;  %120 = vperm.xlu0 %1531, %v25_v16   ;;  %v1751_v15 = vrot.slane %v75_v3, %v471_v4  ;;  %v1753_v16 = vrot.slane %v75_v3, %v603_v5 }
  0x22   :  { %129 = vperm.xlu1 %1532, %v28_v17   ;;  %126 = vperm.xlu0 %1531, %v27_v18   ;;  %v1755_v17 = vrot.slane %v75_v3, %v735_v6  ;;  %v1757_v18 = vrot.slane %v75_v3, %v867_v7 }
  0x26   :  { %135 = vperm.xlu1 %1532, %v30_v19   ;;  %132 = vperm.xlu0 %1531, %v29_v20   ;;  %v1759_v19 = vrot.slane %v75_v3, %v999_v8  ;;  %v1761_v20 = vrot.slane %v75_v3, %v1131_v9 }
  0x2a   :  { %141 = vperm.xlu1 %1532, %v32_v21   ;;  %138 = vperm.xlu0 %1531, %v31_v22  }
  0x2e   :  { %147 = vperm.xlu1 %1532, %v34_v23   ;;  %144 = vperm.xlu0 %1531, %v33_v24   ;;  %v1763_v23 = vrot.slane %v76_v10, %v271_v1  ;;  %v1765_v24 = vrot.slane %v76_v10, %v339_v2 }
  0x32   :  { %153 = vperm.xlu1 %1532, %v36_v25   ;;  %150 = vperm.xlu0 %1531, %v35_v26  }
  0x36   :  { %159 = vperm.xlu1 %1532, %v38_v27   ;;  %156 = vperm.xlu0 %1531, %v37_v28  }
  0x3a   :  { %165 = vperm.xlu1 %1532, %v40_v29   ;;  %162 = vperm.xlu0 %1531, %v39_v30  }
  0x3e   :  { %171 = vperm.xlu1 %1532, %v42_v31   ;;  %168 = vperm.xlu0 %1531, %v41_v32  }
  0x42   :  { %177 = vperm.xlu1 %1532, %v44_v33   ;;  %174 = vperm.xlu0 %1531, %v43_v34  }
  0x46   :  { %183 = vperm.xlu1 %1532, %v46_v35   ;;  %180 = vperm.xlu0 %1531, %v45_v36  }
  0x4a   :  { %189 = vperm.xlu1 %1532, %v48_v37   ;;  %186 = vperm.xlu0 %1531, %v47_v38  }
  0x4e   :  { %195 = vperm.xlu1 %1532, %v50_v39   ;;  %192 = vperm.xlu0 %1531, %v49_v40  }
  0x52   :  { %201 = vperm.xlu1 %1532, %v52_v41   ;;  %198 = vperm.xlu0 %1531, %v51_v42  }
  0x56   :  { %207 = vperm.xlu1 %1532, %v54_v43   ;;  %204 = vperm.xlu0 %1531, %v53_v44  }
  0x5a   :  { %213 = vperm.xlu1 %1532, %v56_v45   ;;  %210 = vperm.xlu0 %1531, %v55_v46  }
  0x5e   :  { %219 = vperm.xlu1 %1532, %v58_v47   ;;  %216 = vperm.xlu0 %1531, %v57_v48  }
  0x62   :  { %225 = vperm.xlu1 %1532, %v60_v49   ;;  %222 = vperm.xlu0 %1531, %v59_v50  }
  0x66   :  { %231 = vperm.xlu1 %1532, %v62_v51   ;;  %228 = vperm.xlu0 %1531, %v61_v52  }
  0x6a   :  { %237 = vperm.xlu1 %1532, %v64_v53   ;;  %234 = vperm.xlu0 %1531, %v63_v54  }
  0x6e   :  { %243 = vperm.xlu1 %1532, %v66_v55   ;;  %240 = vperm.xlu0 %1531, %v65_v56  }
  0x72   :  { %249 = vperm.xlu1 %1532, %v68_v57   ;;  %246 = vperm.xlu0 %1531, %v67_v58  }
  0x76   :  { %255 = vperm.xlu1 %1532, %v70_v60   ;;  %252 = vperm.xlu0 %1531, %v69_v61  }
  0x7a   :  { %261 = vperm.xlu1 %1532, %v72_v63   ;;  %258 = vperm.xlu0 %1531, %v71_v0  }
  0x7d   :  { %v85_v21 = vpop.permute.xlu1 %84  ;;  %v79_v22 = vpop.permute.xlu0 %78 }
  0x7e   :  { %vm275_vm1 = vcmp.ge.s32.totalorder %v85_v21, 1  ;;  %vm407_vm2 = vcmp.ge.s32.totalorder %v85_v21, 2  ;;  %267 = vperm.xlu1 %1532, %v74_v13   ;;  %264 = vperm.xlu0 %1531, %v73_v14   ;;  %vm539_vm3 = vcmp.ge.s32.totalorder %v85_v21, 3  ;;  %vm671_vm4 = vcmp.ge.s32.totalorder %v85_v21, 4 }
  0x7f   :  { %v343_v25 = vsel %vm275_vm1, %v1743_v12, %v1741_v11  ;;  %vm803_vm5 = vcmp.ge.s32.totalorder %v85_v21, 5  ;;  %vm935_vm6 = vcmp.ge.s32.totalorder %v85_v21, 8  ;;  %vm1067_vm7 = vcmp.ge.s32.totalorder %v85_v21, 16 }
  0x80   :  { %v475_v26 = vsel %vm407_vm2, %v1751_v15, %v343_v25  ;;  %vm273_vm8 = vcmp.ge.s32.totalorder %v79_v22, 1  ;;  %vm1199_vm9 = vcmp.ge.s32.totalorder %v85_v21, 32  ;;  %vm405_vm10 = vcmp.ge.s32.totalorder %v79_v22, 2 }
  0x81   :  { %v607_v27 = vsel %vm539_vm3, %v1753_v16, %v475_v26  ;;  %v341_v28 = vsel %vm273_vm8, %v1743_v12, %v1741_v11  ;;  %vm1331_vm11 = vcmp.ge.s32.totalorder %v85_v21, 64  ;;  %vm537_vm12 = vcmp.ge.s32.totalorder %v79_v22, 3  ;;  %v88_v31 = vpop.permute.xlu1 %87  ;;  %v82_v44 = vpop.permute.xlu0 %81 }
  0x82   :  { %v739_v29 = vsel %vm671_vm4, %v1755_v17, %v607_v27  ;;  %v473_v30 = vsel %vm405_vm10, %v1751_v15, %v341_v28  ;;  %vm669_vm13 = vcmp.ge.s32.totalorder %v79_v22, 4  ;;  %vm801_vm14 = vcmp.ge.s32.totalorder %v79_v22, 5 }
  0x83   :  { %v871_v32 = vsel %vm803_vm5, %v1757_v18, %v739_v29  ;;  %v605_v33 = vsel %vm537_vm12, %v1753_v16, %v473_v30  ;;  %vm933_vm15 = vcmp.ge.s32.totalorder %v79_v22, 8  ;;  %vm1065_vm1 = vcmp.ge.s32.totalorder %v79_v22, 16 }
  0x84   :  { %v1003_v34 = vsel %vm935_vm6, %v1759_v19, %v871_v32  ;;  %v737_v35 = vsel %vm669_vm13, %v1755_v17, %v605_v33  ;;  %vm276_vm2 = vcmp.ge.s32.totalorder %v88_v31, 1  ;;  %vm408_vm3 = vcmp.ge.s32.totalorder %v88_v31, 2 }
  0x85   :  { %v1135_v36 = vsel %vm1067_vm7, %v1761_v20, %v1003_v34  ;;  %v869_v37 = vsel %vm801_vm14, %v1757_v18, %v737_v35  ;;  %vm1197_vm4 = vcmp.ge.s32.totalorder %v79_v22, 32  ;;  %v344_v40 = vsel %vm276_vm2, %v1743_v12, %v1741_v11  ;;  %v94_v52 = vpop.permute.xlu1 %93  ;;  %v91_v63 = vpop.permute.xlu0 %90 }
  0x86   :  { %v1267_v38 = vsel %vm1199_vm9, %v1763_v23, %v1135_v36  ;;  %v1001_v39 = vsel %vm933_vm15, %v1759_v19, %v869_v37  ;;  %v476_v43 = vsel %vm408_vm3, %v1751_v15, %v344_v40  ;;  %vm540_vm5 = vcmp.ge.s32.totalorder %v88_v31, 3 }
  0x87   :  { %v1399_v41 = vsel %vm1331_vm11, %v1765_v24, %v1267_v38  ;;  %v1133_v42 = vsel %vm1065_vm1, %v1761_v20, %v1001_v39  ;;  %vm1329_vm6 = vcmp.ge.s32.totalorder %v79_v22, 64  ;;  %v608_v46 = vsel %vm540_vm5, %v1753_v16, %v476_v43 }
  0x88   :  { %1464 = vst.msk [vmem:[%s2669_s2 + $0x10] sm:$0xff] %vm1461_vm0, %v1399_v41  ;;  %v1265_v45 = vsel %vm1197_vm4, %v1763_v23, %v1133_v42  ;;  %vm672_vm7 = vcmp.ge.s32.totalorder %v88_v31, 4  ;;  %vm804_vm8 = vcmp.ge.s32.totalorder %v88_v31, 5  ;;  %vm936_vm9 = vcmp.ge.s32.totalorder %v88_v31, 8 }
  0x89   :  { %v1397_v47 = vsel %vm1329_vm6, %v1765_v24, %v1265_v45  ;;  %v740_v48 = vsel %vm672_vm7, %v1755_v17, %v608_v46  ;;  %vm274_vm10 = vcmp.ge.s32.totalorder %v82_v44, 1  ;;  %vm406_vm11 = vcmp.ge.s32.totalorder %v82_v44, 2  ;;  %v100_v8 = vpop.permute.xlu1 %99  ;;  %v97_v29 = vpop.permute.xlu0 %96 }
  0x8a   :  { %1462 = vst.msk [vmem:[%s2669_s2] sm:$0xff] %vm1461_vm0, %v1397_v47  ;;  %v872_v49 = vsel %vm804_vm8, %v1757_v18, %v740_v48  ;;  %vm1068_vm12 = vcmp.ge.s32.totalorder %v88_v31, 16  ;;  %vm1200_vm13 = vcmp.ge.s32.totalorder %v88_v31, 32  ;;  %v342_v51 = vsel %vm274_vm10, %v1743_v12, %v1741_v11 }
  0x8b   :  { %v1004_v50 = vsel %vm936_vm9, %v1759_v19, %v872_v49  ;;  %vm1332_vm14 = vcmp.ge.s32.totalorder %v88_v31, 64  ;;  %v474_v54 = vsel %vm406_vm11, %v1751_v15, %v342_v51  ;;  %vm538_vm15 = vcmp.ge.s32.totalorder %v82_v44, 3 }
  0x8c   :  { %v1136_v53 = vsel %vm1068_vm12, %v1761_v20, %v1004_v50  ;;  %v606_v56 = vsel %vm538_vm15, %v1753_v16, %v474_v54  ;;  %vm670_vm1 = vcmp.ge.s32.totalorder %v82_v44, 4  ;;  %vm802_vm2 = vcmp.ge.s32.totalorder %v82_v44, 5 }
  0x8d   :  { %v1268_v55 = vsel %vm1200_vm13, %v1763_v23, %v1136_v53  ;;  %v738_v58 = vsel %vm670_vm1, %v1755_v17, %v606_v56  ;;  %vm934_vm3 = vcmp.ge.s32.totalorder %v82_v44, 8  ;;  %vm278_vm4 = vcmp.ge.s32.totalorder %v94_v52, 1  ;;  %v106_v38 = vpop.permute.xlu1 %105  ;;  %v103_v49 = vpop.permute.xlu0 %102 }
  0x8e   :  { %v1400_v57 = vsel %vm1332_vm14, %v1765_v24, %v1268_v55  ;;  %v870_v59 = vsel %vm802_vm2, %v1757_v18, %v738_v58  ;;  %vm1066_vm5 = vcmp.ge.s32.totalorder %v82_v44, 16  ;;  %v346_v60 = vsel %vm278_vm4, %v1743_v12, %v1741_v11 }
  0x8f   :  { %1465 = vst.msk [vmem:[%s2669_s2 + $0x18] sm:$0xff] %vm1461_vm0, %v1400_v57  ;;  %vm410_vm6 = vcmp.ge.s32.totalorder %v94_v52, 2  ;;  %v1002_v61 = vsel %vm934_vm3, %v1759_v19, %v870_v59  ;;  %vm1198_vm7 = vcmp.ge.s32.totalorder %v82_v44, 32  ;;  %vm542_vm8 = vcmp.ge.s32.totalorder %v94_v52, 3 }
  0x90   :  { %v478_v62 = vsel %vm410_vm6, %v1751_v15, %v346_v60  ;;  %v1134_v0 = vsel %vm1066_vm5, %v1761_v20, %v1002_v61  ;;  %vm1330_vm9 = vcmp.ge.s32.totalorder %v82_v44, 64  ;;  %vm674_vm10 = vcmp.ge.s32.totalorder %v94_v52, 4 }
  0x91   :  { %v610_v1 = vsel %vm542_vm8, %v1753_v16, %v478_v62  ;;  %v1266_v2 = vsel %vm1198_vm7, %v1763_v23, %v1134_v0  ;;  %vm806_vm11 = vcmp.ge.s32.totalorder %v94_v52, 5  ;;  %vm938_vm12 = vcmp.ge.s32.totalorder %v94_v52, 8  ;;  %v112_v58 = vpop.permute.xlu1 %111 }
  0x92   :  { %v742_v3 = vsel %vm674_vm10, %v1755_v17, %v610_v1  ;;  %v1398_v4 = vsel %vm1330_vm9, %v1765_v24, %v1266_v2  ;;  %vm277_vm13 = vcmp.ge.s32.totalorder %v91_v63, 1  ;;  %vm409_vm14 = vcmp.ge.s32.totalorder %v91_v63, 2 }
  0x93   :  { %v874_v5 = vsel %vm806_vm11, %v1757_v18, %v742_v3  ;;  %1463 = vst.msk [vmem:[%s2669_s2 + $0x8] sm:$0xff] %vm1461_vm0, %v1398_v4  ;;  %vm1070_vm15 = vcmp.ge.s32.totalorder %v94_v52, 16  ;;  %vm1202_vm1 = vcmp.ge.s32.totalorder %v94_v52, 32  ;;  %v345_v7 = vsel %vm277_vm13, %v1743_v12, %v1741_v11 }
  0x94   :  { %v1006_v6 = vsel %vm938_vm12, %v1759_v19, %v874_v5  ;;  %vm1334_vm2 = vcmp.ge.s32.totalorder %v94_v52, 64  ;;  %v477_v10 = vsel %vm409_vm14, %v1751_v15, %v345_v7  ;;  %vm541_vm3 = vcmp.ge.s32.totalorder %v91_v63, 3  ;;  %v109_v5 = vpop.permute.xlu0 %108 }
  0x95   :  { %v1138_v9 = vsel %vm1070_vm15, %v1761_v20, %v1006_v6  ;;  %v609_v14 = vsel %vm541_vm3, %v1753_v16, %v477_v10  ;;  %vm673_vm4 = vcmp.ge.s32.totalorder %v91_v63, 4  ;;  %vm805_vm5 = vcmp.ge.s32.totalorder %v91_v63, 5 }
  0x96   :  { %v1270_v13 = vsel %vm1202_vm1, %v1763_v23, %v1138_v9  ;;  %v741_v22 = vsel %vm673_vm4, %v1755_v17, %v609_v14  ;;  %vm937_vm6 = vcmp.ge.s32.totalorder %v91_v63, 8  ;;  %vm280_vm7 = vcmp.ge.s32.totalorder %v100_v8, 1 }
  0x97   :  { %v1402_v21 = vsel %vm1334_vm2, %v1765_v24, %v1270_v13  ;;  %v873_v25 = vsel %vm805_vm5, %v1757_v18, %v741_v22  ;;  %vm1069_vm8 = vcmp.ge.s32.totalorder %v91_v63, 16  ;;  %v348_v26 = vsel %vm280_vm7, %v1743_v12, %v1741_v11  ;;  %v118_v22 = vpop.permute.xlu1 %117 }
  0x98   :  { %1467 = vst.msk [vmem:[%s2669_s2 + $0x28] sm:$0xff] %vm1461_vm0, %v1402_v21  ;;  %vm412_vm9 = vcmp.ge.s32.totalorder %v100_v8, 2  ;;  %v1005_v27 = vsel %vm937_vm6, %v1759_v19, %v873_v25  ;;  %vm1201_vm10 = vcmp.ge.s32.totalorder %v91_v63, 32  ;;  %vm544_vm11 = vcmp.ge.s32.totalorder %v100_v8, 3 }
  0x99   :  { %v480_v28 = vsel %vm412_vm9, %v1751_v15, %v348_v26  ;;  %v1137_v30 = vsel %vm1069_vm8, %v1761_v20, %v1005_v27  ;;  %vm1333_vm12 = vcmp.ge.s32.totalorder %v91_v63, 64  ;;  %vm676_vm13 = vcmp.ge.s32.totalorder %v100_v8, 4 }
  0x9a   :  { %v612_v31 = vsel %vm544_vm11, %v1753_v16, %v480_v28  ;;  %v1269_v32 = vsel %vm1201_vm10, %v1763_v23, %v1137_v30  ;;  %vm808_vm14 = vcmp.ge.s32.totalorder %v100_v8, 5  ;;  %vm940_vm15 = vcmp.ge.s32.totalorder %v100_v8, 8 }
  0x9b   :  { %v744_v33 = vsel %vm676_vm13, %v1755_v17, %v612_v31  ;;  %v1401_v34 = vsel %vm1333_vm12, %v1765_v24, %v1269_v32  ;;  %vm279_vm1 = vcmp.ge.s32.totalorder %v97_v29, 1  ;;  %vm411_vm2 = vcmp.ge.s32.totalorder %v97_v29, 2 }
  0x9c   :  { %v876_v35 = vsel %vm808_vm14, %v1757_v18, %v744_v33  ;;  %1466 = vst.msk [vmem:[%s2669_s2 + $0x20] sm:$0xff] %vm1461_vm0, %v1401_v34  ;;  %vm1072_vm3 = vcmp.ge.s32.totalorder %v100_v8, 16  ;;  %vm1204_vm4 = vcmp.ge.s32.totalorder %v100_v8, 32  ;;  %v347_v37 = vsel %vm279_vm1, %v1743_v12, %v1741_v11 }
  0x9d   :  { %v1008_v36 = vsel %vm940_vm15, %v1759_v19, %v876_v35  ;;  %vm1336_vm5 = vcmp.ge.s32.totalorder %v100_v8, 64  ;;  %v479_v40 = vsel %vm411_vm2, %v1751_v15, %v347_v37  ;;  %vm543_vm6 = vcmp.ge.s32.totalorder %v97_v29, 3  ;;  %v115_v35 = vpop.permute.xlu0 %114 }
  0x9e   :  { %v1140_v39 = vsel %vm1072_vm3, %v1761_v20, %v1008_v36  ;;  %v611_v42 = vsel %vm543_vm6, %v1753_v16, %v479_v40  ;;  %vm675_vm7 = vcmp.ge.s32.totalorder %v97_v29, 4  ;;  %vm807_vm8 = vcmp.ge.s32.totalorder %v97_v29, 5 }
  0x9f   :  { %v1272_v41 = vsel %vm1204_vm4, %v1763_v23, %v1140_v39  ;;  %v743_v44 = vsel %vm675_vm7, %v1755_v17, %v611_v42  ;;  %vm939_vm9 = vcmp.ge.s32.totalorder %v97_v29, 8  ;;  %vm282_vm10 = vcmp.ge.s32.totalorder %v106_v38, 1 }
  0xa0   :  { %v1404_v43 = vsel %vm1336_vm5, %v1765_v24, %v1272_v41  ;;  %v875_v45 = vsel %vm807_vm8, %v1757_v18, %v743_v44  ;;  %vm1071_vm11 = vcmp.ge.s32.totalorder %v97_v29, 16  ;;  %v350_v46 = vsel %vm282_vm10, %v1743_v12, %v1741_v11  ;;  %v124_v44 = vpop.permute.xlu1 %123 }
  0xa1   :  { %1469 = vst.msk [vmem:[%s2669_s2 + $0x38] sm:$0xff] %vm1461_vm0, %v1404_v43  ;;  %vm414_vm12 = vcmp.ge.s32.totalorder %v106_v38, 2  ;;  %v1007_v47 = vsel %vm939_vm9, %v1759_v19, %v875_v45  ;;  %vm1203_vm13 = vcmp.ge.s32.totalorder %v97_v29, 32  ;;  %vm546_vm14 = vcmp.ge.s32.totalorder %v106_v38, 3 }
  0xa2   :  { %v482_v48 = vsel %vm414_vm12, %v1751_v15, %v350_v46  ;;  %v1139_v50 = vsel %vm1071_vm11, %v1761_v20, %v1007_v47  ;;  %vm1335_vm15 = vcmp.ge.s32.totalorder %v97_v29, 64  ;;  %vm678_vm1 = vcmp.ge.s32.totalorder %v106_v38, 4 }
  0xa3   :  { %v614_v51 = vsel %vm546_vm14, %v1753_v16, %v482_v48  ;;  %v1271_v52 = vsel %vm1203_vm13, %v1763_v23, %v1139_v50  ;;  %vm810_vm2 = vcmp.ge.s32.totalorder %v106_v38, 5  ;;  %vm942_vm3 = vcmp.ge.s32.totalorder %v106_v38, 8 }
  0xa4   :  { %v746_v53 = vsel %vm678_vm1, %v1755_v17, %v614_v51  ;;  %v1403_v54 = vsel %vm1335_vm15, %v1765_v24, %v1271_v52  ;;  %vm281_vm4 = vcmp.ge.s32.totalorder %v103_v49, 1  ;;  %vm413_vm5 = vcmp.ge.s32.totalorder %v103_v49, 2 }
  0xa5   :  { %v878_v55 = vsel %vm810_vm2, %v1757_v18, %v746_v53  ;;  %1468 = vst.msk [vmem:[%s2669_s2 + $0x30] sm:$0xff] %vm1461_vm0, %v1403_v54  ;;  %vm1074_vm6 = vcmp.ge.s32.totalorder %v106_v38, 16  ;;  %vm1206_vm7 = vcmp.ge.s32.totalorder %v106_v38, 32  ;;  %v349_v57 = vsel %vm281_vm4, %v1743_v12, %v1741_v11 }
  0xa6   :  { %v1010_v56 = vsel %vm942_vm3, %v1759_v19, %v878_v55  ;;  %vm1338_vm8 = vcmp.ge.s32.totalorder %v106_v38, 64  ;;  %v481_v60 = vsel %vm413_vm5, %v1751_v15, %v349_v57  ;;  %vm545_vm9 = vcmp.ge.s32.totalorder %v103_v49, 3  ;;  %v121_v55 = vpop.permute.xlu0 %120 }
  0xa7   :  { %v1142_v59 = vsel %vm1074_vm6, %v1761_v20, %v1010_v56  ;;  %v613_v62 = vsel %vm545_vm9, %v1753_v16, %v481_v60  ;;  %vm677_vm10 = vcmp.ge.s32.totalorder %v103_v49, 4  ;;  %vm809_vm11 = vcmp.ge.s32.totalorder %v103_v49, 5 }
  0xa8   :  { %v1274_v61 = vsel %vm1206_vm7, %v1763_v23, %v1142_v59  ;;  %v745_v0 = vsel %vm677_vm10, %v1755_v17, %v613_v62  ;;  %vm941_vm12 = vcmp.ge.s32.totalorder %v103_v49, 8  ;;  %vm284_vm13 = vcmp.ge.s32.totalorder %v112_v58, 1 }
  0xa9   :  { %v1406_v63 = vsel %vm1338_vm8, %v1765_v24, %v1274_v61  ;;  %v877_v1 = vsel %vm809_vm11, %v1757_v18, %v745_v0  ;;  %vm1073_vm14 = vcmp.ge.s32.totalorder %v103_v49, 16  ;;  %v352_v2 = vsel %vm284_vm13, %v1743_v12, %v1741_v11  ;;  %v130_v0 = vpop.permute.xlu1 %129 }
  0xaa   :  { %1471 = vst.msk [vmem:[%s2669_s2 + $0x48] sm:$0xff] %vm1461_vm0, %v1406_v63  ;;  %vm416_vm15 = vcmp.ge.s32.totalorder %v112_v58, 2  ;;  %v1009_v3 = vsel %vm941_vm12, %v1759_v19, %v877_v1  ;;  %vm1205_vm1 = vcmp.ge.s32.totalorder %v103_v49, 32  ;;  %vm548_vm2 = vcmp.ge.s32.totalorder %v112_v58, 3 }
  0xab   :  { %v484_v4 = vsel %vm416_vm15, %v1751_v15, %v352_v2  ;;  %v1141_v6 = vsel %vm1073_vm14, %v1761_v20, %v1009_v3  ;;  %vm1337_vm3 = vcmp.ge.s32.totalorder %v103_v49, 64  ;;  %vm680_vm4 = vcmp.ge.s32.totalorder %v112_v58, 4 }
  0xac   :  { %v616_v7 = vsel %vm548_vm2, %v1753_v16, %v484_v4  ;;  %v1273_v8 = vsel %vm1205_vm1, %v1763_v23, %v1141_v6  ;;  %vm812_vm5 = vcmp.ge.s32.totalorder %v112_v58, 5  ;;  %vm944_vm6 = vcmp.ge.s32.totalorder %v112_v58, 8 }
  0xad   :  { %v748_v9 = vsel %vm680_vm4, %v1755_v17, %v616_v7  ;;  %v1405_v10 = vsel %vm1337_vm3, %v1765_v24, %v1273_v8  ;;  %vm283_vm7 = vcmp.ge.s32.totalorder %v109_v5, 1  ;;  %vm415_vm8 = vcmp.ge.s32.totalorder %v109_v5, 2 }
  0xae   :  { %v880_v13 = vsel %vm812_vm5, %v1757_v18, %v748_v9  ;;  %1470 = vst.msk [vmem:[%s2669_s2 + $0x40] sm:$0xff] %vm1461_vm0, %v1405_v10  ;;  %vm1076_vm9 = vcmp.ge.s32.totalorder %v112_v58, 16  ;;  %vm1208_vm10 = vcmp.ge.s32.totalorder %v112_v58, 32  ;;  %v351_v21 = vsel %vm283_vm7, %v1743_v12, %v1741_v11 }
  0xaf   :  { %v1012_v14 = vsel %vm944_vm6, %v1759_v19, %v880_v13  ;;  %vm1340_vm11 = vcmp.ge.s32.totalorder %v112_v58, 64  ;;  %v483_v26 = vsel %vm415_vm8, %v1751_v15, %v351_v21  ;;  %vm547_vm12 = vcmp.ge.s32.totalorder %v109_v5, 3  ;;  %v127_v13 = vpop.permute.xlu0 %126 }
  0xb0   :  { %v1144_v25 = vsel %vm1076_vm9, %v1761_v20, %v1012_v14  ;;  %v615_v28 = vsel %vm547_vm12, %v1753_v16, %v483_v26  ;;  %vm679_vm13 = vcmp.ge.s32.totalorder %v109_v5, 4  ;;  %vm811_vm14 = vcmp.ge.s32.totalorder %v109_v5, 5 }
  0xb1   :  { %v1276_v27 = vsel %vm1208_vm10, %v1763_v23, %v1144_v25  ;;  %v747_v30 = vsel %vm679_vm13, %v1755_v17, %v615_v28  ;;  %vm943_vm15 = vcmp.ge.s32.totalorder %v109_v5, 8  ;;  %vm286_vm1 = vcmp.ge.s32.totalorder %v118_v22, 1 }
  0xb2   :  { %v1408_v29 = vsel %vm1340_vm11, %v1765_v24, %v1276_v27  ;;  %v879_v31 = vsel %vm811_vm14, %v1757_v18, %v747_v30  ;;  %vm1075_vm2 = vcmp.ge.s32.totalorder %v109_v5, 16  ;;  %v354_v32 = vsel %vm286_vm1, %v1743_v12, %v1741_v11  ;;  %v136_v30 = vpop.permute.xlu1 %135 }
  0xb3   :  { %1473 = vst.msk [vmem:[%s2669_s2 + $0x58] sm:$0xff] %vm1461_vm0, %v1408_v29  ;;  %vm418_vm3 = vcmp.ge.s32.totalorder %v118_v22, 2  ;;  %v1011_v33 = vsel %vm943_vm15, %v1759_v19, %v879_v31  ;;  %vm1207_vm4 = vcmp.ge.s32.totalorder %v109_v5, 32  ;;  %vm550_vm5 = vcmp.ge.s32.totalorder %v118_v22, 3 }
  0xb4   :  { %v486_v34 = vsel %vm418_vm3, %v1751_v15, %v354_v32  ;;  %v1143_v36 = vsel %vm1075_vm2, %v1761_v20, %v1011_v33  ;;  %vm1339_vm6 = vcmp.ge.s32.totalorder %v109_v5, 64  ;;  %vm682_vm7 = vcmp.ge.s32.totalorder %v118_v22, 4 }
  0xb5   :  { %v618_v37 = vsel %vm550_vm5, %v1753_v16, %v486_v34  ;;  %v1275_v38 = vsel %vm1207_vm4, %v1763_v23, %v1143_v36  ;;  %vm814_vm8 = vcmp.ge.s32.totalorder %v118_v22, 5  ;;  %vm946_vm9 = vcmp.ge.s32.totalorder %v118_v22, 8 }
  0xb6   :  { %v750_v39 = vsel %vm682_vm7, %v1755_v17, %v618_v37  ;;  %v1407_v40 = vsel %vm1339_vm6, %v1765_v24, %v1275_v38  ;;  %vm285_vm10 = vcmp.ge.s32.totalorder %v115_v35, 1  ;;  %vm417_vm11 = vcmp.ge.s32.totalorder %v115_v35, 2 }
  0xb7   :  { %v882_v41 = vsel %vm814_vm8, %v1757_v18, %v750_v39  ;;  %1472 = vst.msk [vmem:[%s2669_s2 + $0x50] sm:$0xff] %vm1461_vm0, %v1407_v40  ;;  %vm1078_vm12 = vcmp.ge.s32.totalorder %v118_v22, 16  ;;  %vm1210_vm13 = vcmp.ge.s32.totalorder %v118_v22, 32  ;;  %v353_v43 = vsel %vm285_vm10, %v1743_v12, %v1741_v11 }
  0xb8   :  { %v1014_v42 = vsel %vm946_vm9, %v1759_v19, %v882_v41  ;;  %vm1342_vm14 = vcmp.ge.s32.totalorder %v118_v22, 64  ;;  %v485_v46 = vsel %vm417_vm11, %v1751_v15, %v353_v43  ;;  %vm549_vm15 = vcmp.ge.s32.totalorder %v115_v35, 3  ;;  %v133_v41 = vpop.permute.xlu0 %132 }
  0xb9   :  { %v1146_v45 = vsel %vm1078_vm12, %v1761_v20, %v1014_v42  ;;  %v617_v48 = vsel %vm549_vm15, %v1753_v16, %v485_v46  ;;  %vm681_vm1 = vcmp.ge.s32.totalorder %v115_v35, 4  ;;  %vm813_vm2 = vcmp.ge.s32.totalorder %v115_v35, 5 }
  0xba   :  { %v1278_v47 = vsel %vm1210_vm13, %v1763_v23, %v1146_v45  ;;  %v749_v50 = vsel %vm681_vm1, %v1755_v17, %v617_v48  ;;  %vm945_vm3 = vcmp.ge.s32.totalorder %v115_v35, 8  ;;  %vm288_vm4 = vcmp.ge.s32.totalorder %v124_v44, 1 }
  0xbb   :  { %v1410_v49 = vsel %vm1342_vm14, %v1765_v24, %v1278_v47  ;;  %v881_v51 = vsel %vm813_vm2, %v1757_v18, %v749_v50  ;;  %vm1077_vm5 = vcmp.ge.s32.totalorder %v115_v35, 16  ;;  %v356_v52 = vsel %vm288_vm4, %v1743_v12, %v1741_v11  ;;  %v142_v50 = vpop.permute.xlu1 %141 }
  0xbc   :  { %1475 = vst.msk [vmem:[%s2669_s2 + $0x68] sm:$0xff] %vm1461_vm0, %v1410_v49  ;;  %vm420_vm6 = vcmp.ge.s32.totalorder %v124_v44, 2  ;;  %v1013_v53 = vsel %vm945_vm3, %v1759_v19, %v881_v51  ;;  %vm1209_vm7 = vcmp.ge.s32.totalorder %v115_v35, 32  ;;  %vm552_vm8 = vcmp.ge.s32.totalorder %v124_v44, 3 }
  0xbd   :  { %v488_v54 = vsel %vm420_vm6, %v1751_v15, %v356_v52  ;;  %v1145_v56 = vsel %vm1077_vm5, %v1761_v20, %v1013_v53  ;;  %vm1341_vm9 = vcmp.ge.s32.totalorder %v115_v35, 64  ;;  %vm684_vm10 = vcmp.ge.s32.totalorder %v124_v44, 4 }
  0xbe   :  { %v620_v57 = vsel %vm552_vm8, %v1753_v16, %v488_v54  ;;  %v1277_v58 = vsel %vm1209_vm7, %v1763_v23, %v1145_v56  ;;  %vm816_vm11 = vcmp.ge.s32.totalorder %v124_v44, 5  ;;  %vm948_vm12 = vcmp.ge.s32.totalorder %v124_v44, 8 }
  0xbf   :  { %v752_v59 = vsel %vm684_vm10, %v1755_v17, %v620_v57  ;;  %v1409_v60 = vsel %vm1341_vm9, %v1765_v24, %v1277_v58  ;;  %vm287_vm13 = vcmp.ge.s32.totalorder %v121_v55, 1  ;;  %vm419_vm14 = vcmp.ge.s32.totalorder %v121_v55, 2 }
  0xc0   :  { %v884_v61 = vsel %vm816_vm11, %v1757_v18, %v752_v59  ;;  %1474 = vst.msk [vmem:[%s2669_s2 + $0x60] sm:$0xff] %vm1461_vm0, %v1409_v60  ;;  %vm1080_vm15 = vcmp.ge.s32.totalorder %v124_v44, 16  ;;  %vm1212_vm1 = vcmp.ge.s32.totalorder %v124_v44, 32  ;;  %v355_v63 = vsel %vm287_vm13, %v1743_v12, %v1741_v11 }
  0xc1   :  { %v1016_v62 = vsel %vm948_vm12, %v1759_v19, %v884_v61  ;;  %vm1344_vm2 = vcmp.ge.s32.totalorder %v124_v44, 64  ;;  %v487_v2 = vsel %vm419_vm14, %v1751_v15, %v355_v63  ;;  %vm551_vm3 = vcmp.ge.s32.totalorder %v121_v55, 3  ;;  %v139_v61 = vpop.permute.xlu0 %138 }
  0xc2   :  { %v1148_v1 = vsel %vm1080_vm15, %v1761_v20, %v1016_v62  ;;  %v619_v4 = vsel %vm551_vm3, %v1753_v16, %v487_v2  ;;  %vm683_vm4 = vcmp.ge.s32.totalorder %v121_v55, 4  ;;  %vm815_vm5 = vcmp.ge.s32.totalorder %v121_v55, 5 }
  0xc3   :  { %v1280_v3 = vsel %vm1212_vm1, %v1763_v23, %v1148_v1  ;;  %v751_v6 = vsel %vm683_vm4, %v1755_v17, %v619_v4  ;;  %vm947_vm6 = vcmp.ge.s32.totalorder %v121_v55, 8  ;;  %vm290_vm7 = vcmp.ge.s32.totalorder %v130_v0, 1 }
  0xc4   :  { %v1412_v5 = vsel %vm1344_vm2, %v1765_v24, %v1280_v3  ;;  %v883_v7 = vsel %vm815_vm5, %v1757_v18, %v751_v6  ;;  %vm1079_vm8 = vcmp.ge.s32.totalorder %v121_v55, 16  ;;  %v358_v8 = vsel %vm290_vm7, %v1743_v12, %v1741_v11  ;;  %v148_v6 = vpop.permute.xlu1 %147 }
  0xc5   :  { %1477 = vst.msk [vmem:[%s2669_s2 + $0x78] sm:$0xff] %vm1461_vm0, %v1412_v5  ;;  %vm422_vm9 = vcmp.ge.s32.totalorder %v130_v0, 2  ;;  %v1015_v9 = vsel %vm947_vm6, %v1759_v19, %v883_v7  ;;  %vm1211_vm10 = vcmp.ge.s32.totalorder %v121_v55, 32  ;;  %vm554_vm11 = vcmp.ge.s32.totalorder %v130_v0, 3 }
  0xc6   :  { %v490_v10 = vsel %vm422_vm9, %v1751_v15, %v358_v8  ;;  %v1147_v14 = vsel %vm1079_vm8, %v1761_v20, %v1015_v9  ;;  %vm1343_vm12 = vcmp.ge.s32.totalorder %v121_v55, 64  ;;  %vm686_vm13 = vcmp.ge.s32.totalorder %v130_v0, 4 }
  0xc7   :  { %v622_v21 = vsel %vm554_vm11, %v1753_v16, %v490_v10  ;;  %v1279_v22 = vsel %vm1211_vm10, %v1763_v23, %v1147_v14  ;;  %vm818_vm14 = vcmp.ge.s32.totalorder %v130_v0, 5  ;;  %vm950_vm15 = vcmp.ge.s32.totalorder %v130_v0, 8 }
  0xc8   :  { %v754_v25 = vsel %vm686_vm13, %v1755_v17, %v622_v21  ;;  %v1411_v26 = vsel %vm1343_vm12, %v1765_v24, %v1279_v22  ;;  %vm289_vm1 = vcmp.ge.s32.totalorder %v127_v13, 1  ;;  %vm421_vm2 = vcmp.ge.s32.totalorder %v127_v13, 2 }
  0xc9   :  { %v886_v27 = vsel %vm818_vm14, %v1757_v18, %v754_v25  ;;  %1476 = vst.msk [vmem:[%s2669_s2 + $0x70] sm:$0xff] %vm1461_vm0, %v1411_v26  ;;  %vm1082_vm3 = vcmp.ge.s32.totalorder %v130_v0, 16  ;;  %vm1214_vm4 = vcmp.ge.s32.totalorder %v130_v0, 32  ;;  %v357_v29 = vsel %vm289_vm1, %v1743_v12, %v1741_v11 }
  0xca   :  { %v1018_v28 = vsel %vm950_vm15, %v1759_v19, %v886_v27  ;;  %vm1346_vm5 = vcmp.ge.s32.totalorder %v130_v0, 64  ;;  %v489_v32 = vsel %vm421_vm2, %v1751_v15, %v357_v29  ;;  %vm553_vm6 = vcmp.ge.s32.totalorder %v127_v13, 3  ;;  %v145_v27 = vpop.permute.xlu0 %144 }
  0xcb   :  { %v1150_v31 = vsel %vm1082_vm3, %v1761_v20, %v1018_v28  ;;  %v621_v34 = vsel %vm553_vm6, %v1753_v16, %v489_v32  ;;  %vm685_vm7 = vcmp.ge.s32.totalorder %v127_v13, 4  ;;  %vm817_vm8 = vcmp.ge.s32.totalorder %v127_v13, 5 }
  0xcc   :  { %v1282_v33 = vsel %vm1214_vm4, %v1763_v23, %v1150_v31  ;;  %v753_v36 = vsel %vm685_vm7, %v1755_v17, %v621_v34  ;;  %vm949_vm9 = vcmp.ge.s32.totalorder %v127_v13, 8  ;;  %vm292_vm10 = vcmp.ge.s32.totalorder %v136_v30, 1 }
  0xcd   :  { %v1414_v35 = vsel %vm1346_vm5, %v1765_v24, %v1282_v33  ;;  %v885_v37 = vsel %vm817_vm8, %v1757_v18, %v753_v36  ;;  %vm1081_vm11 = vcmp.ge.s32.totalorder %v127_v13, 16  ;;  %v360_v38 = vsel %vm292_vm10, %v1743_v12, %v1741_v11  ;;  %v154_v36 = vpop.permute.xlu1 %153 }
  0xce   :  { %1479 = vst.msk [vmem:[%s2669_s2 + $0x88] sm:$0xff] %vm1461_vm0, %v1414_v35  ;;  %vm424_vm12 = vcmp.ge.s32.totalorder %v136_v30, 2  ;;  %v1017_v39 = vsel %vm949_vm9, %v1759_v19, %v885_v37  ;;  %vm1213_vm13 = vcmp.ge.s32.totalorder %v127_v13, 32  ;;  %vm556_vm14 = vcmp.ge.s32.totalorder %v136_v30, 3 }
  0xcf   :  { %v492_v40 = vsel %vm424_vm12, %v1751_v15, %v360_v38  ;;  %v1149_v42 = vsel %vm1081_vm11, %v1761_v20, %v1017_v39  ;;  %vm1345_vm15 = vcmp.ge.s32.totalorder %v127_v13, 64  ;;  %vm688_vm1 = vcmp.ge.s32.totalorder %v136_v30, 4 }
  0xd0   :  { %v624_v43 = vsel %vm556_vm14, %v1753_v16, %v492_v40  ;;  %v1281_v44 = vsel %vm1213_vm13, %v1763_v23, %v1149_v42  ;;  %vm820_vm2 = vcmp.ge.s32.totalorder %v136_v30, 5  ;;  %vm952_vm3 = vcmp.ge.s32.totalorder %v136_v30, 8 }
  0xd1   :  { %v756_v45 = vsel %vm688_vm1, %v1755_v17, %v624_v43  ;;  %v1413_v46 = vsel %vm1345_vm15, %v1765_v24, %v1281_v44  ;;  %vm291_vm4 = vcmp.ge.s32.totalorder %v133_v41, 1  ;;  %vm423_vm5 = vcmp.ge.s32.totalorder %v133_v41, 2 }
  0xd2   :  { %v888_v47 = vsel %vm820_vm2, %v1757_v18, %v756_v45  ;;  %1478 = vst.msk [vmem:[%s2669_s2 + $0x80] sm:$0xff] %vm1461_vm0, %v1413_v46  ;;  %vm1084_vm6 = vcmp.ge.s32.totalorder %v136_v30, 16  ;;  %vm1216_vm7 = vcmp.ge.s32.totalorder %v136_v30, 32  ;;  %v359_v49 = vsel %vm291_vm4, %v1743_v12, %v1741_v11 }
  0xd3   :  { %v1020_v48 = vsel %vm952_vm3, %v1759_v19, %v888_v47  ;;  %vm1348_vm8 = vcmp.ge.s32.totalorder %v136_v30, 64  ;;  %v491_v52 = vsel %vm423_vm5, %v1751_v15, %v359_v49  ;;  %vm555_vm9 = vcmp.ge.s32.totalorder %v133_v41, 3  ;;  %v151_v47 = vpop.permute.xlu0 %150 }
  0xd4   :  { %v1152_v51 = vsel %vm1084_vm6, %v1761_v20, %v1020_v48  ;;  %v623_v54 = vsel %vm555_vm9, %v1753_v16, %v491_v52  ;;  %vm687_vm10 = vcmp.ge.s32.totalorder %v133_v41, 4  ;;  %vm819_vm11 = vcmp.ge.s32.totalorder %v133_v41, 5 }
  0xd5   :  { %v1284_v53 = vsel %vm1216_vm7, %v1763_v23, %v1152_v51  ;;  %v755_v56 = vsel %vm687_vm10, %v1755_v17, %v623_v54  ;;  %vm951_vm12 = vcmp.ge.s32.totalorder %v133_v41, 8  ;;  %vm294_vm13 = vcmp.ge.s32.totalorder %v142_v50, 1 }
  0xd6   :  { %v1416_v55 = vsel %vm1348_vm8, %v1765_v24, %v1284_v53  ;;  %v887_v57 = vsel %vm819_vm11, %v1757_v18, %v755_v56  ;;  %vm1083_vm14 = vcmp.ge.s32.totalorder %v133_v41, 16  ;;  %v362_v58 = vsel %vm294_vm13, %v1743_v12, %v1741_v11  ;;  %v160_v56 = vpop.permute.xlu1 %159 }
  0xd7   :  { %1481 = vst.msk [vmem:[%s2669_s2 + $0x98] sm:$0xff] %vm1461_vm0, %v1416_v55  ;;  %vm426_vm15 = vcmp.ge.s32.totalorder %v142_v50, 2  ;;  %v1019_v59 = vsel %vm951_vm12, %v1759_v19, %v887_v57  ;;  %vm1215_vm1 = vcmp.ge.s32.totalorder %v133_v41, 32  ;;  %vm558_vm2 = vcmp.ge.s32.totalorder %v142_v50, 3 }
  0xd8   :  { %v494_v60 = vsel %vm426_vm15, %v1751_v15, %v362_v58  ;;  %v1151_v62 = vsel %vm1083_vm14, %v1761_v20, %v1019_v59  ;;  %vm1347_vm3 = vcmp.ge.s32.totalorder %v133_v41, 64  ;;  %vm690_vm4 = vcmp.ge.s32.totalorder %v142_v50, 4 }
  0xd9   :  { %v626_v63 = vsel %vm558_vm2, %v1753_v16, %v494_v60  ;;  %v1283_v0 = vsel %vm1215_vm1, %v1763_v23, %v1151_v62  ;;  %vm822_vm5 = vcmp.ge.s32.totalorder %v142_v50, 5  ;;  %vm954_vm6 = vcmp.ge.s32.totalorder %v142_v50, 8 }
  0xda   :  { %v758_v1 = vsel %vm690_vm4, %v1755_v17, %v626_v63  ;;  %v1415_v2 = vsel %vm1347_vm3, %v1765_v24, %v1283_v0  ;;  %vm293_vm7 = vcmp.ge.s32.totalorder %v139_v61, 1  ;;  %vm425_vm8 = vcmp.ge.s32.totalorder %v139_v61, 2 }
  0xdb   :  { %v890_v3 = vsel %vm822_vm5, %v1757_v18, %v758_v1  ;;  %1480 = vst.msk [vmem:[%s2669_s2 + $0x90] sm:$0xff] %vm1461_vm0, %v1415_v2  ;;  %vm1086_vm9 = vcmp.ge.s32.totalorder %v142_v50, 16  ;;  %vm1218_vm10 = vcmp.ge.s32.totalorder %v142_v50, 32  ;;  %v361_v5 = vsel %vm293_vm7, %v1743_v12, %v1741_v11 }
  0xdc   :  { %v1022_v4 = vsel %vm954_vm6, %v1759_v19, %v890_v3  ;;  %vm1350_vm11 = vcmp.ge.s32.totalorder %v142_v50, 64  ;;  %v493_v8 = vsel %vm425_vm8, %v1751_v15, %v361_v5  ;;  %vm557_vm12 = vcmp.ge.s32.totalorder %v139_v61, 3  ;;  %v157_v3 = vpop.permute.xlu0 %156 }
  0xdd   :  { %v1154_v7 = vsel %vm1086_vm9, %v1761_v20, %v1022_v4  ;;  %v625_v10 = vsel %vm557_vm12, %v1753_v16, %v493_v8  ;;  %vm689_vm13 = vcmp.ge.s32.totalorder %v139_v61, 4  ;;  %vm821_vm14 = vcmp.ge.s32.totalorder %v139_v61, 5 }
  0xde   :  { %v1286_v9 = vsel %vm1218_vm10, %v1763_v23, %v1154_v7  ;;  %v757_v14 = vsel %vm689_vm13, %v1755_v17, %v625_v10  ;;  %vm953_vm15 = vcmp.ge.s32.totalorder %v139_v61, 8  ;;  %vm296_vm1 = vcmp.ge.s32.totalorder %v148_v6, 1 }
  0xdf   :  { %v1418_v13 = vsel %vm1350_vm11, %v1765_v24, %v1286_v9  ;;  %v889_v21 = vsel %vm821_vm14, %v1757_v18, %v757_v14  ;;  %vm1085_vm2 = vcmp.ge.s32.totalorder %v139_v61, 16  ;;  %v364_v22 = vsel %vm296_vm1, %v1743_v12, %v1741_v11  ;;  %v166_v14 = vpop.permute.xlu1 %165 }
  0xe0   :  { %1483 = vst.msk [vmem:[%s2669_s2 + $0xa8] sm:$0xff] %vm1461_vm0, %v1418_v13  ;;  %vm428_vm3 = vcmp.ge.s32.totalorder %v148_v6, 2  ;;  %v1021_v25 = vsel %vm953_vm15, %v1759_v19, %v889_v21  ;;  %vm1217_vm4 = vcmp.ge.s32.totalorder %v139_v61, 32  ;;  %vm560_vm5 = vcmp.ge.s32.totalorder %v148_v6, 3 }
  0xe1   :  { %v496_v26 = vsel %vm428_vm3, %v1751_v15, %v364_v22  ;;  %v1153_v28 = vsel %vm1085_vm2, %v1761_v20, %v1021_v25  ;;  %vm1349_vm6 = vcmp.ge.s32.totalorder %v139_v61, 64  ;;  %vm692_vm7 = vcmp.ge.s32.totalorder %v148_v6, 4 }
  0xe2   :  { %v628_v29 = vsel %vm560_vm5, %v1753_v16, %v496_v26  ;;  %v1285_v30 = vsel %vm1217_vm4, %v1763_v23, %v1153_v28  ;;  %vm824_vm8 = vcmp.ge.s32.totalorder %v148_v6, 5  ;;  %vm956_vm9 = vcmp.ge.s32.totalorder %v148_v6, 8 }
  0xe3   :  { %v760_v31 = vsel %vm692_vm7, %v1755_v17, %v628_v29  ;;  %v1417_v32 = vsel %vm1349_vm6, %v1765_v24, %v1285_v30  ;;  %vm295_vm10 = vcmp.ge.s32.totalorder %v145_v27, 1  ;;  %vm427_vm11 = vcmp.ge.s32.totalorder %v145_v27, 2 }
  0xe4   :  { %v892_v33 = vsel %vm824_vm8, %v1757_v18, %v760_v31  ;;  %1482 = vst.msk [vmem:[%s2669_s2 + $0xa0] sm:$0xff] %vm1461_vm0, %v1417_v32  ;;  %vm1088_vm12 = vcmp.ge.s32.totalorder %v148_v6, 16  ;;  %vm1220_vm13 = vcmp.ge.s32.totalorder %v148_v6, 32  ;;  %v363_v35 = vsel %vm295_vm10, %v1743_v12, %v1741_v11 }
  0xe5   :  { %v1024_v34 = vsel %vm956_vm9, %v1759_v19, %v892_v33  ;;  %vm1352_vm14 = vcmp.ge.s32.totalorder %v148_v6, 64  ;;  %v495_v38 = vsel %vm427_vm11, %v1751_v15, %v363_v35  ;;  %vm559_vm15 = vcmp.ge.s32.totalorder %v145_v27, 3  ;;  %v163_v33 = vpop.permute.xlu0 %162 }
  0xe6   :  { %v1156_v37 = vsel %vm1088_vm12, %v1761_v20, %v1024_v34  ;;  %v627_v40 = vsel %vm559_vm15, %v1753_v16, %v495_v38  ;;  %vm691_vm1 = vcmp.ge.s32.totalorder %v145_v27, 4  ;;  %vm823_vm2 = vcmp.ge.s32.totalorder %v145_v27, 5 }
  0xe7   :  { %v1288_v39 = vsel %vm1220_vm13, %v1763_v23, %v1156_v37  ;;  %v759_v42 = vsel %vm691_vm1, %v1755_v17, %v627_v40  ;;  %vm955_vm3 = vcmp.ge.s32.totalorder %v145_v27, 8  ;;  %vm298_vm4 = vcmp.ge.s32.totalorder %v154_v36, 1 }
  0xe8   :  { %v1420_v41 = vsel %vm1352_vm14, %v1765_v24, %v1288_v39  ;;  %v891_v43 = vsel %vm823_vm2, %v1757_v18, %v759_v42  ;;  %vm1087_vm5 = vcmp.ge.s32.totalorder %v145_v27, 16  ;;  %v366_v44 = vsel %vm298_vm4, %v1743_v12, %v1741_v11  ;;  %v172_v42 = vpop.permute.xlu1 %171 }
  0xe9   :  { %1485 = vst.msk [vmem:[%s2669_s2 + $0xb8] sm:$0xff] %vm1461_vm0, %v1420_v41  ;;  %vm430_vm6 = vcmp.ge.s32.totalorder %v154_v36, 2  ;;  %v1023_v45 = vsel %vm955_vm3, %v1759_v19, %v891_v43  ;;  %vm1219_vm7 = vcmp.ge.s32.totalorder %v145_v27, 32  ;;  %vm562_vm8 = vcmp.ge.s32.totalorder %v154_v36, 3 }
  0xea   :  { %v498_v46 = vsel %vm430_vm6, %v1751_v15, %v366_v44  ;;  %v1155_v48 = vsel %vm1087_vm5, %v1761_v20, %v1023_v45  ;;  %vm1351_vm9 = vcmp.ge.s32.totalorder %v145_v27, 64  ;;  %vm694_vm10 = vcmp.ge.s32.totalorder %v154_v36, 4 }
  0xeb   :  { %v630_v49 = vsel %vm562_vm8, %v1753_v16, %v498_v46  ;;  %v1287_v50 = vsel %vm1219_vm7, %v1763_v23, %v1155_v48  ;;  %vm826_vm11 = vcmp.ge.s32.totalorder %v154_v36, 5  ;;  %vm958_vm12 = vcmp.ge.s32.totalorder %v154_v36, 8 }
  0xec   :  { %v762_v51 = vsel %vm694_vm10, %v1755_v17, %v630_v49  ;;  %v1419_v52 = vsel %vm1351_vm9, %v1765_v24, %v1287_v50  ;;  %vm297_vm13 = vcmp.ge.s32.totalorder %v151_v47, 1  ;;  %vm429_vm14 = vcmp.ge.s32.totalorder %v151_v47, 2 }
  0xed   :  { %v894_v53 = vsel %vm826_vm11, %v1757_v18, %v762_v51  ;;  %1484 = vst.msk [vmem:[%s2669_s2 + $0xb0] sm:$0xff] %vm1461_vm0, %v1419_v52  ;;  %vm1090_vm15 = vcmp.ge.s32.totalorder %v154_v36, 16  ;;  %vm1222_vm1 = vcmp.ge.s32.totalorder %v154_v36, 32  ;;  %v365_v55 = vsel %vm297_vm13, %v1743_v12, %v1741_v11 }
  0xee   :  { %v1026_v54 = vsel %vm958_vm12, %v1759_v19, %v894_v53  ;;  %vm1354_vm2 = vcmp.ge.s32.totalorder %v154_v36, 64  ;;  %v497_v58 = vsel %vm429_vm14, %v1751_v15, %v365_v55  ;;  %vm561_vm3 = vcmp.ge.s32.totalorder %v151_v47, 3  ;;  %v169_v53 = vpop.permute.xlu0 %168 }
  0xef   :  { %v1158_v57 = vsel %vm1090_vm15, %v1761_v20, %v1026_v54  ;;  %v629_v60 = vsel %vm561_vm3, %v1753_v16, %v497_v58  ;;  %vm693_vm4 = vcmp.ge.s32.totalorder %v151_v47, 4  ;;  %vm825_vm5 = vcmp.ge.s32.totalorder %v151_v47, 5 }
  0xf0   :  { %v1290_v59 = vsel %vm1222_vm1, %v1763_v23, %v1158_v57  ;;  %v761_v62 = vsel %vm693_vm4, %v1755_v17, %v629_v60  ;;  %vm957_vm6 = vcmp.ge.s32.totalorder %v151_v47, 8  ;;  %vm300_vm7 = vcmp.ge.s32.totalorder %v160_v56, 1 }
  0xf1   :  { %v1422_v61 = vsel %vm1354_vm2, %v1765_v24, %v1290_v59  ;;  %v893_v63 = vsel %vm825_vm5, %v1757_v18, %v761_v62  ;;  %vm1089_vm8 = vcmp.ge.s32.totalorder %v151_v47, 16  ;;  %v368_v0 = vsel %vm300_vm7, %v1743_v12, %v1741_v11  ;;  %v178_v62 = vpop.permute.xlu1 %177 }
  0xf2   :  { %1487 = vst.msk [vmem:[%s2669_s2 + $0xc8] sm:$0xff] %vm1461_vm0, %v1422_v61  ;;  %vm432_vm9 = vcmp.ge.s32.totalorder %v160_v56, 2  ;;  %v1025_v1 = vsel %vm957_vm6, %v1759_v19, %v893_v63  ;;  %vm1221_vm10 = vcmp.ge.s32.totalorder %v151_v47, 32  ;;  %vm564_vm11 = vcmp.ge.s32.totalorder %v160_v56, 3 }
  0xf3   :  { %v500_v2 = vsel %vm432_vm9, %v1751_v15, %v368_v0  ;;  %v1157_v4 = vsel %vm1089_vm8, %v1761_v20, %v1025_v1  ;;  %vm1353_vm12 = vcmp.ge.s32.totalorder %v151_v47, 64  ;;  %vm696_vm13 = vcmp.ge.s32.totalorder %v160_v56, 4 }
  0xf4   :  { %v632_v5 = vsel %vm564_vm11, %v1753_v16, %v500_v2  ;;  %v1289_v6 = vsel %vm1221_vm10, %v1763_v23, %v1157_v4  ;;  %vm828_vm14 = vcmp.ge.s32.totalorder %v160_v56, 5  ;;  %vm960_vm15 = vcmp.ge.s32.totalorder %v160_v56, 8 }
  0xf5   :  { %v764_v7 = vsel %vm696_vm13, %v1755_v17, %v632_v5  ;;  %v1421_v8 = vsel %vm1353_vm12, %v1765_v24, %v1289_v6  ;;  %vm299_vm1 = vcmp.ge.s32.totalorder %v157_v3, 1  ;;  %vm431_vm2 = vcmp.ge.s32.totalorder %v157_v3, 2 }
  0xf6   :  { %v896_v9 = vsel %vm828_vm14, %v1757_v18, %v764_v7  ;;  %1486 = vst.msk [vmem:[%s2669_s2 + $0xc0] sm:$0xff] %vm1461_vm0, %v1421_v8  ;;  %vm1092_vm3 = vcmp.ge.s32.totalorder %v160_v56, 16  ;;  %vm1224_vm4 = vcmp.ge.s32.totalorder %v160_v56, 32  ;;  %v367_v13 = vsel %vm299_vm1, %v1743_v12, %v1741_v11 }
  0xf7   :  { %v1028_v10 = vsel %vm960_vm15, %v1759_v19, %v896_v9  ;;  %vm1356_vm5 = vcmp.ge.s32.totalorder %v160_v56, 64  ;;  %v499_v22 = vsel %vm431_vm2, %v1751_v15, %v367_v13  ;;  %vm563_vm6 = vcmp.ge.s32.totalorder %v157_v3, 3  ;;  %v175_v9 = vpop.permute.xlu0 %174 }
  0xf8   :  { %v1160_v21 = vsel %vm1092_vm3, %v1761_v20, %v1028_v10  ;;  %v631_v26 = vsel %vm563_vm6, %v1753_v16, %v499_v22  ;;  %vm695_vm7 = vcmp.ge.s32.totalorder %v157_v3, 4  ;;  %vm827_vm8 = vcmp.ge.s32.totalorder %v157_v3, 5 }
  0xf9   :  { %v1292_v25 = vsel %vm1224_vm4, %v1763_v23, %v1160_v21  ;;  %v763_v28 = vsel %vm695_vm7, %v1755_v17, %v631_v26  ;;  %vm959_vm9 = vcmp.ge.s32.totalorder %v157_v3, 8  ;;  %vm302_vm10 = vcmp.ge.s32.totalorder %v166_v14, 1 }
  0xfa   :  { %v1424_v27 = vsel %vm1356_vm5, %v1765_v24, %v1292_v25  ;;  %v895_v29 = vsel %vm827_vm8, %v1757_v18, %v763_v28  ;;  %vm1091_vm11 = vcmp.ge.s32.totalorder %v157_v3, 16  ;;  %v370_v30 = vsel %vm302_vm10, %v1743_v12, %v1741_v11  ;;  %v184_v28 = vpop.permute.xlu1 %183 }
  0xfb   :  { %1489 = vst.msk [vmem:[%s2669_s2 + $0xd8] sm:$0xff] %vm1461_vm0, %v1424_v27  ;;  %vm434_vm12 = vcmp.ge.s32.totalorder %v166_v14, 2  ;;  %v1027_v31 = vsel %vm959_vm9, %v1759_v19, %v895_v29  ;;  %vm1223_vm13 = vcmp.ge.s32.totalorder %v157_v3, 32  ;;  %vm566_vm14 = vcmp.ge.s32.totalorder %v166_v14, 3 }
  0xfc   :  { %v502_v32 = vsel %vm434_vm12, %v1751_v15, %v370_v30  ;;  %v1159_v34 = vsel %vm1091_vm11, %v1761_v20, %v1027_v31  ;;  %vm1355_vm15 = vcmp.ge.s32.totalorder %v157_v3, 64  ;;  %vm698_vm1 = vcmp.ge.s32.totalorder %v166_v14, 4 }
  0xfd   :  { %v634_v35 = vsel %vm566_vm14, %v1753_v16, %v502_v32  ;;  %v1291_v36 = vsel %vm1223_vm13, %v1763_v23, %v1159_v34  ;;  %vm830_vm2 = vcmp.ge.s32.totalorder %v166_v14, 5  ;;  %vm962_vm3 = vcmp.ge.s32.totalorder %v166_v14, 8 }
  0xfe   :  { %v766_v37 = vsel %vm698_vm1, %v1755_v17, %v634_v35  ;;  %v1423_v38 = vsel %vm1355_vm15, %v1765_v24, %v1291_v36  ;;  %vm301_vm4 = vcmp.ge.s32.totalorder %v163_v33, 1  ;;  %vm433_vm5 = vcmp.ge.s32.totalorder %v163_v33, 2 }
  0xff   :  { %v898_v39 = vsel %vm830_vm2, %v1757_v18, %v766_v37  ;;  %1488 = vst.msk [vmem:[%s2669_s2 + $0xd0] sm:$0xff] %vm1461_vm0, %v1423_v38  ;;  %vm1094_vm6 = vcmp.ge.s32.totalorder %v166_v14, 16  ;;  %vm1226_vm7 = vcmp.ge.s32.totalorder %v166_v14, 32  ;;  %v369_v41 = vsel %vm301_vm4, %v1743_v12, %v1741_v11 }
 0x100   :  { %v1030_v40 = vsel %vm962_vm3, %v1759_v19, %v898_v39  ;;  %vm1358_vm8 = vcmp.ge.s32.totalorder %v166_v14, 64  ;;  %v501_v44 = vsel %vm433_vm5, %v1751_v15, %v369_v41  ;;  %vm565_vm9 = vcmp.ge.s32.totalorder %v163_v33, 3  ;;  %v181_v39 = vpop.permute.xlu0 %180 }
 0x101   :  { %v1162_v43 = vsel %vm1094_vm6, %v1761_v20, %v1030_v40  ;;  %v633_v46 = vsel %vm565_vm9, %v1753_v16, %v501_v44  ;;  %vm697_vm10 = vcmp.ge.s32.totalorder %v163_v33, 4  ;;  %vm829_vm11 = vcmp.ge.s32.totalorder %v163_v33, 5 }
 0x102   :  { %v1294_v45 = vsel %vm1226_vm7, %v1763_v23, %v1162_v43  ;;  %v765_v48 = vsel %vm697_vm10, %v1755_v17, %v633_v46  ;;  %vm961_vm12 = vcmp.ge.s32.totalorder %v163_v33, 8  ;;  %vm304_vm13 = vcmp.ge.s32.totalorder %v172_v42, 1 }
 0x103   :  { %v1426_v47 = vsel %vm1358_vm8, %v1765_v24, %v1294_v45  ;;  %v897_v49 = vsel %vm829_vm11, %v1757_v18, %v765_v48  ;;  %vm1093_vm14 = vcmp.ge.s32.totalorder %v163_v33, 16  ;;  %v372_v50 = vsel %vm304_vm13, %v1743_v12, %v1741_v11  ;;  %v190_v48 = vpop.permute.xlu1 %189 }
 0x104   :  { %1491 = vst.msk [vmem:[%s2669_s2 + $0xe8] sm:$0xff] %vm1461_vm0, %v1426_v47  ;;  %vm436_vm15 = vcmp.ge.s32.totalorder %v172_v42, 2  ;;  %v1029_v51 = vsel %vm961_vm12, %v1759_v19, %v897_v49  ;;  %vm1225_vm1 = vcmp.ge.s32.totalorder %v163_v33, 32  ;;  %vm568_vm2 = vcmp.ge.s32.totalorder %v172_v42, 3 }
 0x105   :  { %v504_v52 = vsel %vm436_vm15, %v1751_v15, %v372_v50  ;;  %v1161_v54 = vsel %vm1093_vm14, %v1761_v20, %v1029_v51  ;;  %vm1357_vm3 = vcmp.ge.s32.totalorder %v163_v33, 64  ;;  %vm700_vm4 = vcmp.ge.s32.totalorder %v172_v42, 4 }
 0x106   :  { %v636_v55 = vsel %vm568_vm2, %v1753_v16, %v504_v52  ;;  %v1293_v56 = vsel %vm1225_vm1, %v1763_v23, %v1161_v54  ;;  %vm832_vm5 = vcmp.ge.s32.totalorder %v172_v42, 5  ;;  %vm964_vm6 = vcmp.ge.s32.totalorder %v172_v42, 8 }
 0x107   :  { %v768_v57 = vsel %vm700_vm4, %v1755_v17, %v636_v55  ;;  %v1425_v58 = vsel %vm1357_vm3, %v1765_v24, %v1293_v56  ;;  %vm303_vm7 = vcmp.ge.s32.totalorder %v169_v53, 1  ;;  %vm435_vm8 = vcmp.ge.s32.totalorder %v169_v53, 2 }
 0x108   :  { %v900_v59 = vsel %vm832_vm5, %v1757_v18, %v768_v57  ;;  %1490 = vst.msk [vmem:[%s2669_s2 + $0xe0] sm:$0xff] %vm1461_vm0, %v1425_v58  ;;  %vm1096_vm9 = vcmp.ge.s32.totalorder %v172_v42, 16  ;;  %vm1228_vm10 = vcmp.ge.s32.totalorder %v172_v42, 32  ;;  %v371_v61 = vsel %vm303_vm7, %v1743_v12, %v1741_v11 }
 0x109   :  { %v1032_v60 = vsel %vm964_vm6, %v1759_v19, %v900_v59  ;;  %vm1360_vm11 = vcmp.ge.s32.totalorder %v172_v42, 64  ;;  %v503_v0 = vsel %vm435_vm8, %v1751_v15, %v371_v61  ;;  %vm567_vm12 = vcmp.ge.s32.totalorder %v169_v53, 3  ;;  %v187_v59 = vpop.permute.xlu0 %186 }
 0x10a   :  { %v1164_v63 = vsel %vm1096_vm9, %v1761_v20, %v1032_v60  ;;  %v635_v2 = vsel %vm567_vm12, %v1753_v16, %v503_v0  ;;  %vm699_vm13 = vcmp.ge.s32.totalorder %v169_v53, 4  ;;  %vm831_vm14 = vcmp.ge.s32.totalorder %v169_v53, 5 }
 0x10b   :  { %v1296_v1 = vsel %vm1228_vm10, %v1763_v23, %v1164_v63  ;;  %v767_v4 = vsel %vm699_vm13, %v1755_v17, %v635_v2  ;;  %vm963_vm15 = vcmp.ge.s32.totalorder %v169_v53, 8  ;;  %vm306_vm1 = vcmp.ge.s32.totalorder %v178_v62, 1 }
 0x10c   :  { %v1428_v3 = vsel %vm1360_vm11, %v1765_v24, %v1296_v1  ;;  %v899_v5 = vsel %vm831_vm14, %v1757_v18, %v767_v4  ;;  %vm1095_vm2 = vcmp.ge.s32.totalorder %v169_v53, 16  ;;  %v374_v6 = vsel %vm306_vm1, %v1743_v12, %v1741_v11  ;;  %v196_v4 = vpop.permute.xlu1 %195 }
 0x10d   :  { %1493 = vst.msk [vmem:[%s2669_s2 + $0xf8] sm:$0xff] %vm1461_vm0, %v1428_v3  ;;  %vm438_vm3 = vcmp.ge.s32.totalorder %v178_v62, 2  ;;  %v1031_v7 = vsel %vm963_vm15, %v1759_v19, %v899_v5  ;;  %vm1227_vm4 = vcmp.ge.s32.totalorder %v169_v53, 32  ;;  %vm570_vm5 = vcmp.ge.s32.totalorder %v178_v62, 3 }
 0x10e   :  { %v506_v8 = vsel %vm438_vm3, %v1751_v15, %v374_v6  ;;  %v1163_v10 = vsel %vm1095_vm2, %v1761_v20, %v1031_v7  ;;  %vm1359_vm6 = vcmp.ge.s32.totalorder %v169_v53, 64  ;;  %vm702_vm7 = vcmp.ge.s32.totalorder %v178_v62, 4 }
 0x10f   :  { %v638_v13 = vsel %vm570_vm5, %v1753_v16, %v506_v8  ;;  %v1295_v14 = vsel %vm1227_vm4, %v1763_v23, %v1163_v10  ;;  %vm834_vm8 = vcmp.ge.s32.totalorder %v178_v62, 5  ;;  %vm966_vm9 = vcmp.ge.s32.totalorder %v178_v62, 8 }
 0x110   :  { %v770_v21 = vsel %vm702_vm7, %v1755_v17, %v638_v13  ;;  %v1427_v22 = vsel %vm1359_vm6, %v1765_v24, %v1295_v14  ;;  %vm305_vm10 = vcmp.ge.s32.totalorder %v175_v9, 1  ;;  %vm437_vm11 = vcmp.ge.s32.totalorder %v175_v9, 2 }
 0x111   :  { %v902_v25 = vsel %vm834_vm8, %v1757_v18, %v770_v21  ;;  %1492 = vst.msk [vmem:[%s2669_s2 + $0xf0] sm:$0xff] %vm1461_vm0, %v1427_v22  ;;  %vm1098_vm12 = vcmp.ge.s32.totalorder %v178_v62, 16  ;;  %vm1230_vm13 = vcmp.ge.s32.totalorder %v178_v62, 32  ;;  %v373_v27 = vsel %vm305_vm10, %v1743_v12, %v1741_v11 }
 0x112   :  { %v1034_v26 = vsel %vm966_vm9, %v1759_v19, %v902_v25  ;;  %vm1362_vm14 = vcmp.ge.s32.totalorder %v178_v62, 64  ;;  %v505_v30 = vsel %vm437_vm11, %v1751_v15, %v373_v27  ;;  %vm569_vm15 = vcmp.ge.s32.totalorder %v175_v9, 3  ;;  %v193_v25 = vpop.permute.xlu0 %192 }
 0x113   :  { %v1166_v29 = vsel %vm1098_vm12, %v1761_v20, %v1034_v26  ;;  %v637_v32 = vsel %vm569_vm15, %v1753_v16, %v505_v30  ;;  %vm701_vm1 = vcmp.ge.s32.totalorder %v175_v9, 4  ;;  %vm833_vm2 = vcmp.ge.s32.totalorder %v175_v9, 5 }
 0x114   :  { %v1298_v31 = vsel %vm1230_vm13, %v1763_v23, %v1166_v29  ;;  %v769_v34 = vsel %vm701_vm1, %v1755_v17, %v637_v32  ;;  %vm965_vm3 = vcmp.ge.s32.totalorder %v175_v9, 8  ;;  %vm308_vm4 = vcmp.ge.s32.totalorder %v184_v28, 1 }
 0x115   :  { %v1430_v33 = vsel %vm1362_vm14, %v1765_v24, %v1298_v31  ;;  %v901_v35 = vsel %vm833_vm2, %v1757_v18, %v769_v34  ;;  %vm1097_vm5 = vcmp.ge.s32.totalorder %v175_v9, 16  ;;  %v376_v36 = vsel %vm308_vm4, %v1743_v12, %v1741_v11  ;;  %v202_v34 = vpop.permute.xlu1 %201 }
 0x116   :  { %1495 = vst.msk [vmem:[%s2669_s2 + $0x108] sm:$0xff] %vm1461_vm0, %v1430_v33  ;;  %vm440_vm6 = vcmp.ge.s32.totalorder %v184_v28, 2  ;;  %v1033_v37 = vsel %vm965_vm3, %v1759_v19, %v901_v35  ;;  %vm1229_vm7 = vcmp.ge.s32.totalorder %v175_v9, 32  ;;  %vm572_vm8 = vcmp.ge.s32.totalorder %v184_v28, 3 }
 0x117   :  { %v508_v38 = vsel %vm440_vm6, %v1751_v15, %v376_v36  ;;  %v1165_v40 = vsel %vm1097_vm5, %v1761_v20, %v1033_v37  ;;  %vm1361_vm9 = vcmp.ge.s32.totalorder %v175_v9, 64  ;;  %vm704_vm10 = vcmp.ge.s32.totalorder %v184_v28, 4 }
 0x118   :  { %v640_v41 = vsel %vm572_vm8, %v1753_v16, %v508_v38  ;;  %v1297_v42 = vsel %vm1229_vm7, %v1763_v23, %v1165_v40  ;;  %vm836_vm11 = vcmp.ge.s32.totalorder %v184_v28, 5  ;;  %vm968_vm12 = vcmp.ge.s32.totalorder %v184_v28, 8 }
 0x119   :  { %v772_v43 = vsel %vm704_vm10, %v1755_v17, %v640_v41  ;;  %v1429_v44 = vsel %vm1361_vm9, %v1765_v24, %v1297_v42  ;;  %vm307_vm13 = vcmp.ge.s32.totalorder %v181_v39, 1  ;;  %vm439_vm14 = vcmp.ge.s32.totalorder %v181_v39, 2 }
 0x11a   :  { %v904_v45 = vsel %vm836_vm11, %v1757_v18, %v772_v43  ;;  %1494 = vst.msk [vmem:[%s2669_s2 + $0x100] sm:$0xff] %vm1461_vm0, %v1429_v44  ;;  %vm1100_vm15 = vcmp.ge.s32.totalorder %v184_v28, 16  ;;  %vm1232_vm1 = vcmp.ge.s32.totalorder %v184_v28, 32  ;;  %v375_v47 = vsel %vm307_vm13, %v1743_v12, %v1741_v11 }
 0x11b   :  { %v1036_v46 = vsel %vm968_vm12, %v1759_v19, %v904_v45  ;;  %vm1364_vm2 = vcmp.ge.s32.totalorder %v184_v28, 64  ;;  %v507_v50 = vsel %vm439_vm14, %v1751_v15, %v375_v47  ;;  %vm571_vm3 = vcmp.ge.s32.totalorder %v181_v39, 3  ;;  %v199_v45 = vpop.permute.xlu0 %198 }
 0x11c   :  { %v1168_v49 = vsel %vm1100_vm15, %v1761_v20, %v1036_v46  ;;  %v639_v52 = vsel %vm571_vm3, %v1753_v16, %v507_v50  ;;  %vm703_vm4 = vcmp.ge.s32.totalorder %v181_v39, 4  ;;  %vm835_vm5 = vcmp.ge.s32.totalorder %v181_v39, 5 }
 0x11d   :  { %v1300_v51 = vsel %vm1232_vm1, %v1763_v23, %v1168_v49  ;;  %v771_v54 = vsel %vm703_vm4, %v1755_v17, %v639_v52  ;;  %vm967_vm6 = vcmp.ge.s32.totalorder %v181_v39, 8  ;;  %vm310_vm7 = vcmp.ge.s32.totalorder %v190_v48, 1 }
 0x11e   :  { %v1432_v53 = vsel %vm1364_vm2, %v1765_v24, %v1300_v51  ;;  %v903_v55 = vsel %vm835_vm5, %v1757_v18, %v771_v54  ;;  %vm1099_vm8 = vcmp.ge.s32.totalorder %v181_v39, 16  ;;  %v378_v56 = vsel %vm310_vm7, %v1743_v12, %v1741_v11  ;;  %v208_v54 = vpop.permute.xlu1 %207 }
 0x11f   :  { %1497 = vst.msk [vmem:[%s2669_s2 + $0x118] sm:$0xff] %vm1461_vm0, %v1432_v53  ;;  %vm442_vm9 = vcmp.ge.s32.totalorder %v190_v48, 2  ;;  %v1035_v57 = vsel %vm967_vm6, %v1759_v19, %v903_v55  ;;  %vm1231_vm10 = vcmp.ge.s32.totalorder %v181_v39, 32  ;;  %vm574_vm11 = vcmp.ge.s32.totalorder %v190_v48, 3 }
 0x120   :  { %v510_v58 = vsel %vm442_vm9, %v1751_v15, %v378_v56  ;;  %v1167_v60 = vsel %vm1099_vm8, %v1761_v20, %v1035_v57  ;;  %vm1363_vm12 = vcmp.ge.s32.totalorder %v181_v39, 64  ;;  %vm706_vm13 = vcmp.ge.s32.totalorder %v190_v48, 4 }
 0x121   :  { %v642_v61 = vsel %vm574_vm11, %v1753_v16, %v510_v58  ;;  %v1299_v62 = vsel %vm1231_vm10, %v1763_v23, %v1167_v60  ;;  %vm838_vm14 = vcmp.ge.s32.totalorder %v190_v48, 5  ;;  %vm970_vm15 = vcmp.ge.s32.totalorder %v190_v48, 8 }
 0x122   :  { %v774_v63 = vsel %vm706_vm13, %v1755_v17, %v642_v61  ;;  %v1431_v0 = vsel %vm1363_vm12, %v1765_v24, %v1299_v62  ;;  %vm309_vm1 = vcmp.ge.s32.totalorder %v187_v59, 1  ;;  %vm441_vm2 = vcmp.ge.s32.totalorder %v187_v59, 2 }
 0x123   :  { %v906_v1 = vsel %vm838_vm14, %v1757_v18, %v774_v63  ;;  %1496 = vst.msk [vmem:[%s2669_s2 + $0x110] sm:$0xff] %vm1461_vm0, %v1431_v0  ;;  %vm1102_vm3 = vcmp.ge.s32.totalorder %v190_v48, 16  ;;  %vm1234_vm4 = vcmp.ge.s32.totalorder %v190_v48, 32  ;;  %v377_v3 = vsel %vm309_vm1, %v1743_v12, %v1741_v11 }
 0x124   :  { %v1038_v2 = vsel %vm970_vm15, %v1759_v19, %v906_v1  ;;  %vm1366_vm5 = vcmp.ge.s32.totalorder %v190_v48, 64  ;;  %v509_v6 = vsel %vm441_vm2, %v1751_v15, %v377_v3  ;;  %vm573_vm6 = vcmp.ge.s32.totalorder %v187_v59, 3  ;;  %v205_v1 = vpop.permute.xlu0 %204 }
 0x125   :  { %v1170_v5 = vsel %vm1102_vm3, %v1761_v20, %v1038_v2  ;;  %v641_v8 = vsel %vm573_vm6, %v1753_v16, %v509_v6  ;;  %vm705_vm7 = vcmp.ge.s32.totalorder %v187_v59, 4  ;;  %vm837_vm8 = vcmp.ge.s32.totalorder %v187_v59, 5 }
 0x126   :  { %v1302_v7 = vsel %vm1234_vm4, %v1763_v23, %v1170_v5  ;;  %v773_v10 = vsel %vm705_vm7, %v1755_v17, %v641_v8  ;;  %vm969_vm9 = vcmp.ge.s32.totalorder %v187_v59, 8  ;;  %vm312_vm10 = vcmp.ge.s32.totalorder %v196_v4, 1 }
 0x127   :  { %v1434_v9 = vsel %vm1366_vm5, %v1765_v24, %v1302_v7  ;;  %v905_v13 = vsel %vm837_vm8, %v1757_v18, %v773_v10  ;;  %vm1101_vm11 = vcmp.ge.s32.totalorder %v187_v59, 16  ;;  %v380_v14 = vsel %vm312_vm10, %v1743_v12, %v1741_v11  ;;  %v214_v10 = vpop.permute.xlu1 %213 }
 0x128   :  { %1499 = vst.msk [vmem:[%s2669_s2 + $0x128] sm:$0xff] %vm1461_vm0, %v1434_v9  ;;  %vm444_vm12 = vcmp.ge.s32.totalorder %v196_v4, 2  ;;  %v1037_v21 = vsel %vm969_vm9, %v1759_v19, %v905_v13  ;;  %vm1233_vm13 = vcmp.ge.s32.totalorder %v187_v59, 32  ;;  %vm576_vm14 = vcmp.ge.s32.totalorder %v196_v4, 3 }
 0x129   :  { %v512_v22 = vsel %vm444_vm12, %v1751_v15, %v380_v14  ;;  %v1169_v26 = vsel %vm1101_vm11, %v1761_v20, %v1037_v21  ;;  %vm1365_vm15 = vcmp.ge.s32.totalorder %v187_v59, 64  ;;  %vm708_vm1 = vcmp.ge.s32.totalorder %v196_v4, 4 }
 0x12a   :  { %v644_v27 = vsel %vm576_vm14, %v1753_v16, %v512_v22  ;;  %v1301_v28 = vsel %vm1233_vm13, %v1763_v23, %v1169_v26  ;;  %vm840_vm2 = vcmp.ge.s32.totalorder %v196_v4, 5  ;;  %vm972_vm3 = vcmp.ge.s32.totalorder %v196_v4, 8 }
 0x12b   :  { %v776_v29 = vsel %vm708_vm1, %v1755_v17, %v644_v27  ;;  %v1433_v30 = vsel %vm1365_vm15, %v1765_v24, %v1301_v28  ;;  %vm311_vm4 = vcmp.ge.s32.totalorder %v193_v25, 1  ;;  %vm443_vm5 = vcmp.ge.s32.totalorder %v193_v25, 2 }
 0x12c   :  { %v908_v31 = vsel %vm840_vm2, %v1757_v18, %v776_v29  ;;  %1498 = vst.msk [vmem:[%s2669_s2 + $0x120] sm:$0xff] %vm1461_vm0, %v1433_v30  ;;  %vm1104_vm6 = vcmp.ge.s32.totalorder %v196_v4, 16  ;;  %vm1236_vm7 = vcmp.ge.s32.totalorder %v196_v4, 32  ;;  %v379_v33 = vsel %vm311_vm4, %v1743_v12, %v1741_v11 }
 0x12d   :  { %v1040_v32 = vsel %vm972_vm3, %v1759_v19, %v908_v31  ;;  %vm1368_vm8 = vcmp.ge.s32.totalorder %v196_v4, 64  ;;  %v511_v36 = vsel %vm443_vm5, %v1751_v15, %v379_v33  ;;  %vm575_vm9 = vcmp.ge.s32.totalorder %v193_v25, 3  ;;  %v211_v31 = vpop.permute.xlu0 %210 }
 0x12e   :  { %v1172_v35 = vsel %vm1104_vm6, %v1761_v20, %v1040_v32  ;;  %v643_v38 = vsel %vm575_vm9, %v1753_v16, %v511_v36  ;;  %vm707_vm10 = vcmp.ge.s32.totalorder %v193_v25, 4  ;;  %vm839_vm11 = vcmp.ge.s32.totalorder %v193_v25, 5 }
 0x12f   :  { %v1304_v37 = vsel %vm1236_vm7, %v1763_v23, %v1172_v35  ;;  %v775_v40 = vsel %vm707_vm10, %v1755_v17, %v643_v38  ;;  %vm971_vm12 = vcmp.ge.s32.totalorder %v193_v25, 8  ;;  %vm314_vm13 = vcmp.ge.s32.totalorder %v202_v34, 1 }
 0x130   :  { %v1436_v39 = vsel %vm1368_vm8, %v1765_v24, %v1304_v37  ;;  %v907_v41 = vsel %vm839_vm11, %v1757_v18, %v775_v40  ;;  %vm1103_vm14 = vcmp.ge.s32.totalorder %v193_v25, 16  ;;  %v382_v42 = vsel %vm314_vm13, %v1743_v12, %v1741_v11  ;;  %v220_v40 = vpop.permute.xlu1 %219 }
 0x131   :  { %1501 = vst.msk [vmem:[%s2669_s2 + $0x138] sm:$0xff] %vm1461_vm0, %v1436_v39  ;;  %vm446_vm15 = vcmp.ge.s32.totalorder %v202_v34, 2  ;;  %v1039_v43 = vsel %vm971_vm12, %v1759_v19, %v907_v41  ;;  %vm1235_vm1 = vcmp.ge.s32.totalorder %v193_v25, 32  ;;  %vm578_vm2 = vcmp.ge.s32.totalorder %v202_v34, 3 }
 0x132   :  { %v514_v44 = vsel %vm446_vm15, %v1751_v15, %v382_v42  ;;  %v1171_v46 = vsel %vm1103_vm14, %v1761_v20, %v1039_v43  ;;  %vm1367_vm3 = vcmp.ge.s32.totalorder %v193_v25, 64  ;;  %vm710_vm4 = vcmp.ge.s32.totalorder %v202_v34, 4 }
 0x133   :  { %v646_v47 = vsel %vm578_vm2, %v1753_v16, %v514_v44  ;;  %v1303_v48 = vsel %vm1235_vm1, %v1763_v23, %v1171_v46  ;;  %vm842_vm5 = vcmp.ge.s32.totalorder %v202_v34, 5  ;;  %vm974_vm6 = vcmp.ge.s32.totalorder %v202_v34, 8 }
 0x134   :  { %v778_v49 = vsel %vm710_vm4, %v1755_v17, %v646_v47  ;;  %v1435_v50 = vsel %vm1367_vm3, %v1765_v24, %v1303_v48  ;;  %vm313_vm7 = vcmp.ge.s32.totalorder %v199_v45, 1  ;;  %vm445_vm8 = vcmp.ge.s32.totalorder %v199_v45, 2 }
 0x135   :  { %v910_v51 = vsel %vm842_vm5, %v1757_v18, %v778_v49  ;;  %1500 = vst.msk [vmem:[%s2669_s2 + $0x130] sm:$0xff] %vm1461_vm0, %v1435_v50  ;;  %vm1106_vm9 = vcmp.ge.s32.totalorder %v202_v34, 16  ;;  %vm1238_vm10 = vcmp.ge.s32.totalorder %v202_v34, 32  ;;  %v381_v53 = vsel %vm313_vm7, %v1743_v12, %v1741_v11 }
 0x136   :  { %v1042_v52 = vsel %vm974_vm6, %v1759_v19, %v910_v51  ;;  %vm1370_vm11 = vcmp.ge.s32.totalorder %v202_v34, 64  ;;  %v513_v56 = vsel %vm445_vm8, %v1751_v15, %v381_v53  ;;  %vm577_vm12 = vcmp.ge.s32.totalorder %v199_v45, 3  ;;  %v217_v51 = vpop.permute.xlu0 %216 }
 0x137   :  { %v1174_v55 = vsel %vm1106_vm9, %v1761_v20, %v1042_v52  ;;  %v645_v58 = vsel %vm577_vm12, %v1753_v16, %v513_v56  ;;  %vm709_vm13 = vcmp.ge.s32.totalorder %v199_v45, 4  ;;  %vm841_vm14 = vcmp.ge.s32.totalorder %v199_v45, 5 }
 0x138   :  { %v1306_v57 = vsel %vm1238_vm10, %v1763_v23, %v1174_v55  ;;  %v777_v60 = vsel %vm709_vm13, %v1755_v17, %v645_v58  ;;  %vm973_vm15 = vcmp.ge.s32.totalorder %v199_v45, 8  ;;  %vm316_vm1 = vcmp.ge.s32.totalorder %v208_v54, 1 }
 0x139   :  { %v1438_v59 = vsel %vm1370_vm11, %v1765_v24, %v1306_v57  ;;  %v909_v61 = vsel %vm841_vm14, %v1757_v18, %v777_v60  ;;  %vm1105_vm2 = vcmp.ge.s32.totalorder %v199_v45, 16  ;;  %v384_v62 = vsel %vm316_vm1, %v1743_v12, %v1741_v11  ;;  %v226_v60 = vpop.permute.xlu1 %225 }
 0x13a   :  { %1503 = vst.msk [vmem:[%s2669_s2 + $0x148] sm:$0xff] %vm1461_vm0, %v1438_v59  ;;  %vm448_vm3 = vcmp.ge.s32.totalorder %v208_v54, 2  ;;  %v1041_v63 = vsel %vm973_vm15, %v1759_v19, %v909_v61  ;;  %vm1237_vm4 = vcmp.ge.s32.totalorder %v199_v45, 32  ;;  %vm580_vm5 = vcmp.ge.s32.totalorder %v208_v54, 3 }
 0x13b   :  { %v516_v0 = vsel %vm448_vm3, %v1751_v15, %v384_v62  ;;  %v1173_v2 = vsel %vm1105_vm2, %v1761_v20, %v1041_v63  ;;  %vm1369_vm6 = vcmp.ge.s32.totalorder %v199_v45, 64  ;;  %vm712_vm7 = vcmp.ge.s32.totalorder %v208_v54, 4 }
 0x13c   :  { %v648_v3 = vsel %vm580_vm5, %v1753_v16, %v516_v0  ;;  %v1305_v4 = vsel %vm1237_vm4, %v1763_v23, %v1173_v2  ;;  %vm844_vm8 = vcmp.ge.s32.totalorder %v208_v54, 5  ;;  %vm976_vm9 = vcmp.ge.s32.totalorder %v208_v54, 8 }
 0x13d   :  { %v780_v5 = vsel %vm712_vm7, %v1755_v17, %v648_v3  ;;  %v1437_v6 = vsel %vm1369_vm6, %v1765_v24, %v1305_v4  ;;  %vm315_vm10 = vcmp.ge.s32.totalorder %v205_v1, 1  ;;  %vm447_vm11 = vcmp.ge.s32.totalorder %v205_v1, 2 }
 0x13e   :  { %v912_v7 = vsel %vm844_vm8, %v1757_v18, %v780_v5  ;;  %1502 = vst.msk [vmem:[%s2669_s2 + $0x140] sm:$0xff] %vm1461_vm0, %v1437_v6  ;;  %vm1108_vm12 = vcmp.ge.s32.totalorder %v208_v54, 16  ;;  %vm1240_vm13 = vcmp.ge.s32.totalorder %v208_v54, 32  ;;  %v383_v9 = vsel %vm315_vm10, %v1743_v12, %v1741_v11 }
 0x13f   :  { %v1044_v8 = vsel %vm976_vm9, %v1759_v19, %v912_v7  ;;  %vm1372_vm14 = vcmp.ge.s32.totalorder %v208_v54, 64  ;;  %v515_v14 = vsel %vm447_vm11, %v1751_v15, %v383_v9  ;;  %vm579_vm15 = vcmp.ge.s32.totalorder %v205_v1, 3  ;;  %v223_v7 = vpop.permute.xlu0 %222 }
 0x140   :  { %v1176_v13 = vsel %vm1108_vm12, %v1761_v20, %v1044_v8  ;;  %v647_v22 = vsel %vm579_vm15, %v1753_v16, %v515_v14  ;;  %vm711_vm1 = vcmp.ge.s32.totalorder %v205_v1, 4  ;;  %vm843_vm2 = vcmp.ge.s32.totalorder %v205_v1, 5 }
 0x141   :  { %v1308_v21 = vsel %vm1240_vm13, %v1763_v23, %v1176_v13  ;;  %v779_v26 = vsel %vm711_vm1, %v1755_v17, %v647_v22  ;;  %vm975_vm3 = vcmp.ge.s32.totalorder %v205_v1, 8  ;;  %vm318_vm4 = vcmp.ge.s32.totalorder %v214_v10, 1 }
 0x142   :  { %v1440_v25 = vsel %vm1372_vm14, %v1765_v24, %v1308_v21  ;;  %v911_v27 = vsel %vm843_vm2, %v1757_v18, %v779_v26  ;;  %vm1107_vm5 = vcmp.ge.s32.totalorder %v205_v1, 16  ;;  %v386_v28 = vsel %vm318_vm4, %v1743_v12, %v1741_v11  ;;  %v232_v26 = vpop.permute.xlu1 %231 }
 0x143   :  { %1505 = vst.msk [vmem:[%s2669_s2 + $0x158] sm:$0xff] %vm1461_vm0, %v1440_v25  ;;  %vm450_vm6 = vcmp.ge.s32.totalorder %v214_v10, 2  ;;  %v1043_v29 = vsel %vm975_vm3, %v1759_v19, %v911_v27  ;;  %vm1239_vm7 = vcmp.ge.s32.totalorder %v205_v1, 32  ;;  %vm582_vm8 = vcmp.ge.s32.totalorder %v214_v10, 3 }
 0x144   :  { %v518_v30 = vsel %vm450_vm6, %v1751_v15, %v386_v28  ;;  %v1175_v32 = vsel %vm1107_vm5, %v1761_v20, %v1043_v29  ;;  %vm1371_vm9 = vcmp.ge.s32.totalorder %v205_v1, 64  ;;  %vm714_vm10 = vcmp.ge.s32.totalorder %v214_v10, 4 }
 0x145   :  { %v650_v33 = vsel %vm582_vm8, %v1753_v16, %v518_v30  ;;  %v1307_v34 = vsel %vm1239_vm7, %v1763_v23, %v1175_v32  ;;  %vm846_vm11 = vcmp.ge.s32.totalorder %v214_v10, 5  ;;  %vm978_vm12 = vcmp.ge.s32.totalorder %v214_v10, 8 }
 0x146   :  { %v782_v35 = vsel %vm714_vm10, %v1755_v17, %v650_v33  ;;  %v1439_v36 = vsel %vm1371_vm9, %v1765_v24, %v1307_v34  ;;  %vm317_vm13 = vcmp.ge.s32.totalorder %v211_v31, 1  ;;  %vm449_vm14 = vcmp.ge.s32.totalorder %v211_v31, 2 }
 0x147   :  { %v914_v37 = vsel %vm846_vm11, %v1757_v18, %v782_v35  ;;  %1504 = vst.msk [vmem:[%s2669_s2 + $0x150] sm:$0xff] %vm1461_vm0, %v1439_v36  ;;  %vm1110_vm15 = vcmp.ge.s32.totalorder %v214_v10, 16  ;;  %vm1242_vm1 = vcmp.ge.s32.totalorder %v214_v10, 32  ;;  %v385_v39 = vsel %vm317_vm13, %v1743_v12, %v1741_v11 }
 0x148   :  { %v1046_v38 = vsel %vm978_vm12, %v1759_v19, %v914_v37  ;;  %vm1374_vm2 = vcmp.ge.s32.totalorder %v214_v10, 64  ;;  %v517_v42 = vsel %vm449_vm14, %v1751_v15, %v385_v39  ;;  %vm581_vm3 = vcmp.ge.s32.totalorder %v211_v31, 3  ;;  %v229_v37 = vpop.permute.xlu0 %228 }
 0x149   :  { %v1178_v41 = vsel %vm1110_vm15, %v1761_v20, %v1046_v38  ;;  %v649_v44 = vsel %vm581_vm3, %v1753_v16, %v517_v42  ;;  %vm713_vm4 = vcmp.ge.s32.totalorder %v211_v31, 4  ;;  %vm845_vm5 = vcmp.ge.s32.totalorder %v211_v31, 5 }
 0x14a   :  { %v1310_v43 = vsel %vm1242_vm1, %v1763_v23, %v1178_v41  ;;  %v781_v46 = vsel %vm713_vm4, %v1755_v17, %v649_v44  ;;  %vm977_vm6 = vcmp.ge.s32.totalorder %v211_v31, 8  ;;  %vm320_vm7 = vcmp.ge.s32.totalorder %v220_v40, 1 }
 0x14b   :  { %v1442_v45 = vsel %vm1374_vm2, %v1765_v24, %v1310_v43  ;;  %v913_v47 = vsel %vm845_vm5, %v1757_v18, %v781_v46  ;;  %vm1109_vm8 = vcmp.ge.s32.totalorder %v211_v31, 16  ;;  %v388_v48 = vsel %vm320_vm7, %v1743_v12, %v1741_v11  ;;  %v238_v46 = vpop.permute.xlu1 %237 }
 0x14c   :  { %1507 = vst.msk [vmem:[%s2669_s2 + $0x168] sm:$0xff] %vm1461_vm0, %v1442_v45  ;;  %vm452_vm9 = vcmp.ge.s32.totalorder %v220_v40, 2  ;;  %v1045_v49 = vsel %vm977_vm6, %v1759_v19, %v913_v47  ;;  %vm1241_vm10 = vcmp.ge.s32.totalorder %v211_v31, 32  ;;  %vm584_vm11 = vcmp.ge.s32.totalorder %v220_v40, 3 }
 0x14d   :  { %v520_v50 = vsel %vm452_vm9, %v1751_v15, %v388_v48  ;;  %v1177_v52 = vsel %vm1109_vm8, %v1761_v20, %v1045_v49  ;;  %vm1373_vm12 = vcmp.ge.s32.totalorder %v211_v31, 64  ;;  %vm716_vm13 = vcmp.ge.s32.totalorder %v220_v40, 4 }
 0x14e   :  { %v652_v53 = vsel %vm584_vm11, %v1753_v16, %v520_v50  ;;  %v1309_v54 = vsel %vm1241_vm10, %v1763_v23, %v1177_v52  ;;  %vm848_vm14 = vcmp.ge.s32.totalorder %v220_v40, 5  ;;  %vm980_vm15 = vcmp.ge.s32.totalorder %v220_v40, 8 }
 0x14f   :  { %v784_v55 = vsel %vm716_vm13, %v1755_v17, %v652_v53  ;;  %v1441_v56 = vsel %vm1373_vm12, %v1765_v24, %v1309_v54  ;;  %vm319_vm1 = vcmp.ge.s32.totalorder %v217_v51, 1  ;;  %vm451_vm2 = vcmp.ge.s32.totalorder %v217_v51, 2 }
 0x150   :  { %v916_v57 = vsel %vm848_vm14, %v1757_v18, %v784_v55  ;;  %1506 = vst.msk [vmem:[%s2669_s2 + $0x160] sm:$0xff] %vm1461_vm0, %v1441_v56  ;;  %vm1112_vm3 = vcmp.ge.s32.totalorder %v220_v40, 16  ;;  %vm1244_vm4 = vcmp.ge.s32.totalorder %v220_v40, 32  ;;  %v387_v59 = vsel %vm319_vm1, %v1743_v12, %v1741_v11 }
 0x151   :  { %v1048_v58 = vsel %vm980_vm15, %v1759_v19, %v916_v57  ;;  %vm1376_vm5 = vcmp.ge.s32.totalorder %v220_v40, 64  ;;  %v519_v62 = vsel %vm451_vm2, %v1751_v15, %v387_v59  ;;  %vm583_vm6 = vcmp.ge.s32.totalorder %v217_v51, 3  ;;  %v235_v57 = vpop.permute.xlu0 %234 }
 0x152   :  { %v1180_v61 = vsel %vm1112_vm3, %v1761_v20, %v1048_v58  ;;  %v651_v0 = vsel %vm583_vm6, %v1753_v16, %v519_v62  ;;  %vm715_vm7 = vcmp.ge.s32.totalorder %v217_v51, 4  ;;  %vm847_vm8 = vcmp.ge.s32.totalorder %v217_v51, 5 }
 0x153   :  { %v1312_v63 = vsel %vm1244_vm4, %v1763_v23, %v1180_v61  ;;  %v783_v2 = vsel %vm715_vm7, %v1755_v17, %v651_v0  ;;  %vm979_vm9 = vcmp.ge.s32.totalorder %v217_v51, 8  ;;  %vm322_vm10 = vcmp.ge.s32.totalorder %v226_v60, 1 }
 0x154   :  { %v1444_v1 = vsel %vm1376_vm5, %v1765_v24, %v1312_v63  ;;  %v915_v3 = vsel %vm847_vm8, %v1757_v18, %v783_v2  ;;  %vm1111_vm11 = vcmp.ge.s32.totalorder %v217_v51, 16  ;;  %v390_v4 = vsel %vm322_vm10, %v1743_v12, %v1741_v11  ;;  %v244_v2 = vpop.permute.xlu1 %243 }
 0x155   :  { %1509 = vst.msk [vmem:[%s2669_s2 + $0x178] sm:$0xff] %vm1461_vm0, %v1444_v1  ;;  %vm454_vm12 = vcmp.ge.s32.totalorder %v226_v60, 2  ;;  %v1047_v5 = vsel %vm979_vm9, %v1759_v19, %v915_v3  ;;  %vm1243_vm13 = vcmp.ge.s32.totalorder %v217_v51, 32  ;;  %vm586_vm14 = vcmp.ge.s32.totalorder %v226_v60, 3 }
 0x156   :  { %v522_v6 = vsel %vm454_vm12, %v1751_v15, %v390_v4  ;;  %v1179_v8 = vsel %vm1111_vm11, %v1761_v20, %v1047_v5  ;;  %vm1375_vm15 = vcmp.ge.s32.totalorder %v217_v51, 64  ;;  %vm718_vm1 = vcmp.ge.s32.totalorder %v226_v60, 4 }
 0x157   :  { %v654_v9 = vsel %vm586_vm14, %v1753_v16, %v522_v6  ;;  %v1311_v10 = vsel %vm1243_vm13, %v1763_v23, %v1179_v8  ;;  %vm850_vm2 = vcmp.ge.s32.totalorder %v226_v60, 5  ;;  %vm982_vm3 = vcmp.ge.s32.totalorder %v226_v60, 8 }
 0x158   :  { %v786_v13 = vsel %vm718_vm1, %v1755_v17, %v654_v9  ;;  %v1443_v14 = vsel %vm1375_vm15, %v1765_v24, %v1311_v10  ;;  %vm321_vm4 = vcmp.ge.s32.totalorder %v223_v7, 1  ;;  %vm453_vm5 = vcmp.ge.s32.totalorder %v223_v7, 2 }
 0x159   :  { %v918_v21 = vsel %vm850_vm2, %v1757_v18, %v786_v13  ;;  %1508 = vst.msk [vmem:[%s2669_s2 + $0x170] sm:$0xff] %vm1461_vm0, %v1443_v14  ;;  %vm1114_vm6 = vcmp.ge.s32.totalorder %v226_v60, 16  ;;  %vm1246_vm7 = vcmp.ge.s32.totalorder %v226_v60, 32  ;;  %v389_v25 = vsel %vm321_vm4, %v1743_v12, %v1741_v11 }
 0x15a   :  { %v1050_v22 = vsel %vm982_vm3, %v1759_v19, %v918_v21  ;;  %vm1378_vm8 = vcmp.ge.s32.totalorder %v226_v60, 64  ;;  %v521_v28 = vsel %vm453_vm5, %v1751_v15, %v389_v25  ;;  %vm585_vm9 = vcmp.ge.s32.totalorder %v223_v7, 3  ;;  %v241_v21 = vpop.permute.xlu0 %240 }
 0x15b   :  { %v1182_v27 = vsel %vm1114_vm6, %v1761_v20, %v1050_v22  ;;  %v653_v30 = vsel %vm585_vm9, %v1753_v16, %v521_v28  ;;  %vm717_vm10 = vcmp.ge.s32.totalorder %v223_v7, 4  ;;  %vm849_vm11 = vcmp.ge.s32.totalorder %v223_v7, 5 }
 0x15c   :  { %v1314_v29 = vsel %vm1246_vm7, %v1763_v23, %v1182_v27  ;;  %v785_v32 = vsel %vm717_vm10, %v1755_v17, %v653_v30  ;;  %vm981_vm12 = vcmp.ge.s32.totalorder %v223_v7, 8  ;;  %vm324_vm13 = vcmp.ge.s32.totalorder %v232_v26, 1 }
 0x15d   :  { %v1446_v31 = vsel %vm1378_vm8, %v1765_v24, %v1314_v29  ;;  %v917_v33 = vsel %vm849_vm11, %v1757_v18, %v785_v32  ;;  %vm1113_vm14 = vcmp.ge.s32.totalorder %v223_v7, 16  ;;  %v392_v34 = vsel %vm324_vm13, %v1743_v12, %v1741_v11  ;;  %v250_v32 = vpop.permute.xlu1 %249 }
 0x15e   :  { %1511 = vst.msk [vmem:[%s2669_s2 + $0x188] sm:$0xff] %vm1461_vm0, %v1446_v31  ;;  %vm456_vm15 = vcmp.ge.s32.totalorder %v232_v26, 2  ;;  %v1049_v35 = vsel %vm981_vm12, %v1759_v19, %v917_v33  ;;  %vm1245_vm1 = vcmp.ge.s32.totalorder %v223_v7, 32  ;;  %vm588_vm2 = vcmp.ge.s32.totalorder %v232_v26, 3 }
 0x15f   :  { %v524_v36 = vsel %vm456_vm15, %v1751_v15, %v392_v34  ;;  %v1181_v38 = vsel %vm1113_vm14, %v1761_v20, %v1049_v35  ;;  %vm1377_vm3 = vcmp.ge.s32.totalorder %v223_v7, 64  ;;  %vm720_vm4 = vcmp.ge.s32.totalorder %v232_v26, 4 }
 0x160   :  { %v656_v39 = vsel %vm588_vm2, %v1753_v16, %v524_v36  ;;  %v1313_v40 = vsel %vm1245_vm1, %v1763_v23, %v1181_v38  ;;  %vm852_vm5 = vcmp.ge.s32.totalorder %v232_v26, 5  ;;  %vm984_vm6 = vcmp.ge.s32.totalorder %v232_v26, 8 }
 0x161   :  { %v788_v41 = vsel %vm720_vm4, %v1755_v17, %v656_v39  ;;  %v1445_v42 = vsel %vm1377_vm3, %v1765_v24, %v1313_v40  ;;  %vm323_vm7 = vcmp.ge.s32.totalorder %v229_v37, 1  ;;  %vm455_vm8 = vcmp.ge.s32.totalorder %v229_v37, 2 }
 0x162   :  { %v920_v43 = vsel %vm852_vm5, %v1757_v18, %v788_v41  ;;  %1510 = vst.msk [vmem:[%s2669_s2 + $0x180] sm:$0xff] %vm1461_vm0, %v1445_v42  ;;  %vm1116_vm9 = vcmp.ge.s32.totalorder %v232_v26, 16  ;;  %vm1248_vm10 = vcmp.ge.s32.totalorder %v232_v26, 32  ;;  %v391_v45 = vsel %vm323_vm7, %v1743_v12, %v1741_v11 }
 0x163   :  { %v1052_v44 = vsel %vm984_vm6, %v1759_v19, %v920_v43  ;;  %vm1380_vm11 = vcmp.ge.s32.totalorder %v232_v26, 64  ;;  %v523_v48 = vsel %vm455_vm8, %v1751_v15, %v391_v45  ;;  %vm587_vm12 = vcmp.ge.s32.totalorder %v229_v37, 3  ;;  %v247_v43 = vpop.permute.xlu0 %246 }
 0x164   :  { %v1184_v47 = vsel %vm1116_vm9, %v1761_v20, %v1052_v44  ;;  %v655_v50 = vsel %vm587_vm12, %v1753_v16, %v523_v48  ;;  %vm719_vm13 = vcmp.ge.s32.totalorder %v229_v37, 4  ;;  %vm851_vm14 = vcmp.ge.s32.totalorder %v229_v37, 5 }
 0x165   :  { %v1316_v49 = vsel %vm1248_vm10, %v1763_v23, %v1184_v47  ;;  %v787_v52 = vsel %vm719_vm13, %v1755_v17, %v655_v50  ;;  %vm983_vm15 = vcmp.ge.s32.totalorder %v229_v37, 8  ;;  %vm326_vm1 = vcmp.ge.s32.totalorder %v238_v46, 1 }
 0x166   :  { %v1448_v51 = vsel %vm1380_vm11, %v1765_v24, %v1316_v49  ;;  %v919_v53 = vsel %vm851_vm14, %v1757_v18, %v787_v52  ;;  %vm1115_vm2 = vcmp.ge.s32.totalorder %v229_v37, 16  ;;  %v394_v54 = vsel %vm326_vm1, %v1743_v12, %v1741_v11  ;;  %v256_v52 = vpop.permute.xlu1 %255 }
 0x167   :  { %1513 = vst.msk [vmem:[%s2669_s2 + $0x198] sm:$0xff] %vm1461_vm0, %v1448_v51  ;;  %vm458_vm3 = vcmp.ge.s32.totalorder %v238_v46, 2  ;;  %v1051_v55 = vsel %vm983_vm15, %v1759_v19, %v919_v53  ;;  %vm1247_vm4 = vcmp.ge.s32.totalorder %v229_v37, 32  ;;  %vm590_vm5 = vcmp.ge.s32.totalorder %v238_v46, 3 }
 0x168   :  { %v526_v56 = vsel %vm458_vm3, %v1751_v15, %v394_v54  ;;  %v1183_v58 = vsel %vm1115_vm2, %v1761_v20, %v1051_v55  ;;  %vm1379_vm6 = vcmp.ge.s32.totalorder %v229_v37, 64  ;;  %vm722_vm7 = vcmp.ge.s32.totalorder %v238_v46, 4 }
 0x169   :  { %v658_v59 = vsel %vm590_vm5, %v1753_v16, %v526_v56  ;;  %v1315_v60 = vsel %vm1247_vm4, %v1763_v23, %v1183_v58  ;;  %vm854_vm8 = vcmp.ge.s32.totalorder %v238_v46, 5  ;;  %vm986_vm9 = vcmp.ge.s32.totalorder %v238_v46, 8 }
 0x16a   :  { %v790_v61 = vsel %vm722_vm7, %v1755_v17, %v658_v59  ;;  %v1447_v62 = vsel %vm1379_vm6, %v1765_v24, %v1315_v60  ;;  %vm325_vm10 = vcmp.ge.s32.totalorder %v235_v57, 1  ;;  %vm457_vm11 = vcmp.ge.s32.totalorder %v235_v57, 2 }
 0x16b   :  { %v922_v63 = vsel %vm854_vm8, %v1757_v18, %v790_v61  ;;  %1512 = vst.msk [vmem:[%s2669_s2 + $0x190] sm:$0xff] %vm1461_vm0, %v1447_v62  ;;  %vm1118_vm12 = vcmp.ge.s32.totalorder %v238_v46, 16  ;;  %vm1250_vm13 = vcmp.ge.s32.totalorder %v238_v46, 32  ;;  %v393_v1 = vsel %vm325_vm10, %v1743_v12, %v1741_v11 }
 0x16c   :  { %v1054_v0 = vsel %vm986_vm9, %v1759_v19, %v922_v63  ;;  %vm1382_vm14 = vcmp.ge.s32.totalorder %v238_v46, 64  ;;  %v525_v4 = vsel %vm457_vm11, %v1751_v15, %v393_v1  ;;  %vm589_vm15 = vcmp.ge.s32.totalorder %v235_v57, 3  ;;  %v253_v63 = vpop.permute.xlu0 %252 }
 0x16d   :  { %v1186_v3 = vsel %vm1118_vm12, %v1761_v20, %v1054_v0  ;;  %v657_v6 = vsel %vm589_vm15, %v1753_v16, %v525_v4  ;;  %vm721_vm1 = vcmp.ge.s32.totalorder %v235_v57, 4  ;;  %vm853_vm2 = vcmp.ge.s32.totalorder %v235_v57, 5 }
 0x16e   :  { %v1318_v5 = vsel %vm1250_vm13, %v1763_v23, %v1186_v3  ;;  %v789_v8 = vsel %vm721_vm1, %v1755_v17, %v657_v6  ;;  %vm985_vm3 = vcmp.ge.s32.totalorder %v235_v57, 8  ;;  %vm328_vm4 = vcmp.ge.s32.totalorder %v244_v2, 1 }
 0x16f   :  { %v1450_v7 = vsel %vm1382_vm14, %v1765_v24, %v1318_v5  ;;  %v921_v9 = vsel %vm853_vm2, %v1757_v18, %v789_v8  ;;  %vm1117_vm5 = vcmp.ge.s32.totalorder %v235_v57, 16  ;;  %v396_v10 = vsel %vm328_vm4, %v1743_v12, %v1741_v11  ;;  %v262_v8 = vpop.permute.xlu1 %261 }
 0x170   :  { %1515 = vst.msk [vmem:[%s2669_s2 + $0x1a8] sm:$0xff] %vm1461_vm0, %v1450_v7  ;;  %vm460_vm6 = vcmp.ge.s32.totalorder %v244_v2, 2  ;;  %v1053_v13 = vsel %vm985_vm3, %v1759_v19, %v921_v9  ;;  %vm1249_vm7 = vcmp.ge.s32.totalorder %v235_v57, 32  ;;  %vm592_vm8 = vcmp.ge.s32.totalorder %v244_v2, 3 }
 0x171   :  { %v528_v14 = vsel %vm460_vm6, %v1751_v15, %v396_v10  ;;  %v1185_v22 = vsel %vm1117_vm5, %v1761_v20, %v1053_v13  ;;  %vm1381_vm9 = vcmp.ge.s32.totalorder %v235_v57, 64  ;;  %vm724_vm10 = vcmp.ge.s32.totalorder %v244_v2, 4 }
 0x172   :  { %v660_v25 = vsel %vm592_vm8, %v1753_v16, %v528_v14  ;;  %v1317_v26 = vsel %vm1249_vm7, %v1763_v23, %v1185_v22  ;;  %vm856_vm11 = vcmp.ge.s32.totalorder %v244_v2, 5  ;;  %vm988_vm12 = vcmp.ge.s32.totalorder %v244_v2, 8 }
 0x173   :  { %v792_v27 = vsel %vm724_vm10, %v1755_v17, %v660_v25  ;;  %v1449_v28 = vsel %vm1381_vm9, %v1765_v24, %v1317_v26  ;;  %vm327_vm13 = vcmp.ge.s32.totalorder %v241_v21, 1  ;;  %vm459_vm14 = vcmp.ge.s32.totalorder %v241_v21, 2 }
 0x174   :  { %v924_v29 = vsel %vm856_vm11, %v1757_v18, %v792_v27  ;;  %1514 = vst.msk [vmem:[%s2669_s2 + $0x1a0] sm:$0xff] %vm1461_vm0, %v1449_v28  ;;  %vm1120_vm15 = vcmp.ge.s32.totalorder %v244_v2, 16  ;;  %vm1252_vm1 = vcmp.ge.s32.totalorder %v244_v2, 32  ;;  %v395_v31 = vsel %vm327_vm13, %v1743_v12, %v1741_v11 }
 0x175   :  { %v1056_v30 = vsel %vm988_vm12, %v1759_v19, %v924_v29  ;;  %vm1384_vm2 = vcmp.ge.s32.totalorder %v244_v2, 64  ;;  %v527_v34 = vsel %vm459_vm14, %v1751_v15, %v395_v31  ;;  %vm591_vm3 = vcmp.ge.s32.totalorder %v241_v21, 3  ;;  %v259_v29 = vpop.permute.xlu0 %258 }
 0x176   :  { %v1188_v33 = vsel %vm1120_vm15, %v1761_v20, %v1056_v30  ;;  %v659_v36 = vsel %vm591_vm3, %v1753_v16, %v527_v34  ;;  %vm723_vm4 = vcmp.ge.s32.totalorder %v241_v21, 4  ;;  %vm855_vm5 = vcmp.ge.s32.totalorder %v241_v21, 5 }
 0x177   :  { %v1320_v35 = vsel %vm1252_vm1, %v1763_v23, %v1188_v33  ;;  %v791_v38 = vsel %vm723_vm4, %v1755_v17, %v659_v36  ;;  %vm987_vm6 = vcmp.ge.s32.totalorder %v241_v21, 8  ;;  %vm330_vm7 = vcmp.ge.s32.totalorder %v250_v32, 1 }
 0x178   :  { %v1452_v37 = vsel %vm1384_vm2, %v1765_v24, %v1320_v35  ;;  %v923_v39 = vsel %vm855_vm5, %v1757_v18, %v791_v38  ;;  %vm1119_vm8 = vcmp.ge.s32.totalorder %v241_v21, 16  ;;  %v398_v40 = vsel %vm330_vm7, %v1743_v12, %v1741_v11  ;;  %v268_v38 = vpop.permute.xlu1 %267 }
 0x179   :  { %1517 = vst.msk [vmem:[%s2669_s2 + $0x1b8] sm:$0xff] %vm1461_vm0, %v1452_v37  ;;  %vm462_vm9 = vcmp.ge.s32.totalorder %v250_v32, 2  ;;  %v1055_v41 = vsel %vm987_vm6, %v1759_v19, %v923_v39  ;;  %vm1251_vm10 = vcmp.ge.s32.totalorder %v241_v21, 32  ;;  %vm594_vm11 = vcmp.ge.s32.totalorder %v250_v32, 3 }
 0x17a   :  { %v530_v42 = vsel %vm462_vm9, %v1751_v15, %v398_v40  ;;  %v1187_v44 = vsel %vm1119_vm8, %v1761_v20, %v1055_v41  ;;  %vm1383_vm12 = vcmp.ge.s32.totalorder %v241_v21, 64  ;;  %vm726_vm13 = vcmp.ge.s32.totalorder %v250_v32, 4 }
 0x17b   :  { %v662_v45 = vsel %vm594_vm11, %v1753_v16, %v530_v42  ;;  %v1319_v46 = vsel %vm1251_vm10, %v1763_v23, %v1187_v44  ;;  %vm858_vm14 = vcmp.ge.s32.totalorder %v250_v32, 5  ;;  %vm990_vm15 = vcmp.ge.s32.totalorder %v250_v32, 8 }
 0x17c   :  { %v794_v47 = vsel %vm726_vm13, %v1755_v17, %v662_v45  ;;  %v1451_v48 = vsel %vm1383_vm12, %v1765_v24, %v1319_v46  ;;  %vm329_vm1 = vcmp.ge.s32.totalorder %v247_v43, 1  ;;  %vm461_vm2 = vcmp.ge.s32.totalorder %v247_v43, 2 }
 0x17d   :  { %v926_v49 = vsel %vm858_vm14, %v1757_v18, %v794_v47  ;;  %1516 = vst.msk [vmem:[%s2669_s2 + $0x1b0] sm:$0xff] %vm1461_vm0, %v1451_v48  ;;  %vm1122_vm3 = vcmp.ge.s32.totalorder %v250_v32, 16  ;;  %vm1254_vm4 = vcmp.ge.s32.totalorder %v250_v32, 32  ;;  %v397_v51 = vsel %vm329_vm1, %v1743_v12, %v1741_v11 }
 0x17e   :  { %v1058_v50 = vsel %vm990_vm15, %v1759_v19, %v926_v49  ;;  %vm1386_vm5 = vcmp.ge.s32.totalorder %v250_v32, 64  ;;  %v529_v54 = vsel %vm461_vm2, %v1751_v15, %v397_v51  ;;  %vm593_vm6 = vcmp.ge.s32.totalorder %v247_v43, 3  ;;  %v265_v49 = vpop.permute.xlu0 %264 }
 0x17f   :  { %v1190_v53 = vsel %vm1122_vm3, %v1761_v20, %v1058_v50  ;;  %v661_v56 = vsel %vm593_vm6, %v1753_v16, %v529_v54  ;;  %vm725_vm7 = vcmp.ge.s32.totalorder %v247_v43, 4  ;;  %vm857_vm8 = vcmp.ge.s32.totalorder %v247_v43, 5 }
 0x180   :  { %v1322_v55 = vsel %vm1254_vm4, %v1763_v23, %v1190_v53  ;;  %v793_v58 = vsel %vm725_vm7, %v1755_v17, %v661_v56  ;;  %vm989_vm9 = vcmp.ge.s32.totalorder %v247_v43, 8  ;;  %vm332_vm10 = vcmp.ge.s32.totalorder %v256_v52, 1 }
 0x181   :  { %v1454_v57 = vsel %vm1386_vm5, %v1765_v24, %v1322_v55  ;;  %v925_v59 = vsel %vm857_vm8, %v1757_v18, %v793_v58  ;;  %vm1121_vm11 = vcmp.ge.s32.totalorder %v247_v43, 16  ;;  %v400_v60 = vsel %vm332_vm10, %v1743_v12, %v1741_v11 }
 0x182   :  { %1519 = vst.msk [vmem:[%s2669_s2 + $0x1c8] sm:$0xff] %vm1461_vm0, %v1454_v57  ;;  %vm464_vm12 = vcmp.ge.s32.totalorder %v256_v52, 2  ;;  %v1057_v61 = vsel %vm989_vm9, %v1759_v19, %v925_v59  ;;  %vm1253_vm13 = vcmp.ge.s32.totalorder %v247_v43, 32  ;;  %vm596_vm14 = vcmp.ge.s32.totalorder %v256_v52, 3 }
 0x183   :  { %v532_v62 = vsel %vm464_vm12, %v1751_v15, %v400_v60  ;;  %v1189_v0 = vsel %vm1121_vm11, %v1761_v20, %v1057_v61  ;;  %vm1385_vm15 = vcmp.ge.s32.totalorder %v247_v43, 64  ;;  %vm728_vm1 = vcmp.ge.s32.totalorder %v256_v52, 4 }
 0x184   :  { %v664_v1 = vsel %vm596_vm14, %v1753_v16, %v532_v62  ;;  %v1321_v2 = vsel %vm1253_vm13, %v1763_v23, %v1189_v0  ;;  %vm860_vm2 = vcmp.ge.s32.totalorder %v256_v52, 5  ;;  %vm992_vm3 = vcmp.ge.s32.totalorder %v256_v52, 8 }
 0x185   :  { %v796_v3 = vsel %vm728_vm1, %v1755_v17, %v664_v1  ;;  %v1453_v4 = vsel %vm1385_vm15, %v1765_v24, %v1321_v2  ;;  %vm331_vm4 = vcmp.ge.s32.totalorder %v253_v63, 1  ;;  %vm463_vm5 = vcmp.ge.s32.totalorder %v253_v63, 2 }
 0x186   :  { %v928_v5 = vsel %vm860_vm2, %v1757_v18, %v796_v3  ;;  %1518 = vst.msk [vmem:[%s2669_s2 + $0x1c0] sm:$0xff] %vm1461_vm0, %v1453_v4  ;;  %vm1124_vm6 = vcmp.ge.s32.totalorder %v256_v52, 16  ;;  %vm1256_vm7 = vcmp.ge.s32.totalorder %v256_v52, 32  ;;  %v399_v7 = vsel %vm331_vm4, %v1743_v12, %v1741_v11 }
 0x187   :  { %v1060_v6 = vsel %vm992_vm3, %v1759_v19, %v928_v5  ;;  %vm1388_vm8 = vcmp.ge.s32.totalorder %v256_v52, 64  ;;  %v531_v10 = vsel %vm463_vm5, %v1751_v15, %v399_v7  ;;  %vm595_vm9 = vcmp.ge.s32.totalorder %v253_v63, 3 }
 0x188   :  { %v1192_v9 = vsel %vm1124_vm6, %v1761_v20, %v1060_v6  ;;  %v663_v14 = vsel %vm595_vm9, %v1753_v16, %v531_v10  ;;  %vm727_vm10 = vcmp.ge.s32.totalorder %v253_v63, 4  ;;  %vm859_vm11 = vcmp.ge.s32.totalorder %v253_v63, 5 }
 0x189   :  { %v1324_v13 = vsel %vm1256_vm7, %v1763_v23, %v1192_v9  ;;  %v795_v22 = vsel %vm727_vm10, %v1755_v17, %v663_v14  ;;  %vm991_vm12 = vcmp.ge.s32.totalorder %v253_v63, 8  ;;  %vm334_vm13 = vcmp.ge.s32.totalorder %v262_v8, 1 }
 0x18a   :  { %v1456_v21 = vsel %vm1388_vm8, %v1765_v24, %v1324_v13  ;;  %v927_v25 = vsel %vm859_vm11, %v1757_v18, %v795_v22  ;;  %vm1123_vm14 = vcmp.ge.s32.totalorder %v253_v63, 16  ;;  %v402_v26 = vsel %vm334_vm13, %v1743_v12, %v1741_v11 }
 0x18b   :  { %1521 = vst.msk [vmem:[%s2669_s2 + $0x1d8] sm:$0xff] %vm1461_vm0, %v1456_v21  ;;  %vm466_vm15 = vcmp.ge.s32.totalorder %v262_v8, 2  ;;  %v1059_v27 = vsel %vm991_vm12, %v1759_v19, %v927_v25  ;;  %vm1255_vm1 = vcmp.ge.s32.totalorder %v253_v63, 32  ;;  %vm598_vm2 = vcmp.ge.s32.totalorder %v262_v8, 3 }
 0x18c   :  { %v534_v28 = vsel %vm466_vm15, %v1751_v15, %v402_v26  ;;  %v1191_v30 = vsel %vm1123_vm14, %v1761_v20, %v1059_v27  ;;  %vm1387_vm3 = vcmp.ge.s32.totalorder %v253_v63, 64  ;;  %vm730_vm4 = vcmp.ge.s32.totalorder %v262_v8, 4 }
 0x18d   :  { %v666_v31 = vsel %vm598_vm2, %v1753_v16, %v534_v28  ;;  %v1323_v32 = vsel %vm1255_vm1, %v1763_v23, %v1191_v30  ;;  %vm862_vm5 = vcmp.ge.s32.totalorder %v262_v8, 5  ;;  %vm994_vm6 = vcmp.ge.s32.totalorder %v262_v8, 8 }
 0x18e   :  { %v798_v33 = vsel %vm730_vm4, %v1755_v17, %v666_v31  ;;  %v1455_v34 = vsel %vm1387_vm3, %v1765_v24, %v1323_v32  ;;  %vm333_vm7 = vcmp.ge.s32.totalorder %v259_v29, 1  ;;  %vm465_vm8 = vcmp.ge.s32.totalorder %v259_v29, 2 }
 0x18f   :  { %v930_v35 = vsel %vm862_vm5, %v1757_v18, %v798_v33  ;;  %1520 = vst.msk [vmem:[%s2669_s2 + $0x1d0] sm:$0xff] %vm1461_vm0, %v1455_v34  ;;  %vm1126_vm9 = vcmp.ge.s32.totalorder %v262_v8, 16  ;;  %vm1258_vm10 = vcmp.ge.s32.totalorder %v262_v8, 32  ;;  %v401_v37 = vsel %vm333_vm7, %v1743_v12, %v1741_v11 }
 0x190   :  { %v1062_v36 = vsel %vm994_vm6, %v1759_v19, %v930_v35  ;;  %vm1390_vm11 = vcmp.ge.s32.totalorder %v262_v8, 64  ;;  %v533_v40 = vsel %vm465_vm8, %v1751_v15, %v401_v37  ;;  %vm597_vm12 = vcmp.ge.s32.totalorder %v259_v29, 3 }
 0x191   :  { %v1194_v39 = vsel %vm1126_vm9, %v1761_v20, %v1062_v36  ;;  %v665_v42 = vsel %vm597_vm12, %v1753_v16, %v533_v40  ;;  %vm729_vm13 = vcmp.ge.s32.totalorder %v259_v29, 4  ;;  %vm861_vm14 = vcmp.ge.s32.totalorder %v259_v29, 5 }
 0x192   :  { %v1326_v41 = vsel %vm1258_vm10, %v1763_v23, %v1194_v39  ;;  %v797_v44 = vsel %vm729_vm13, %v1755_v17, %v665_v42  ;;  %vm993_vm15 = vcmp.ge.s32.totalorder %v259_v29, 8  ;;  %vm336_vm1 = vcmp.ge.s32.totalorder %v268_v38, 1 }
 0x193   :  { %v1458_v43 = vsel %vm1390_vm11, %v1765_v24, %v1326_v41  ;;  %v929_v45 = vsel %vm861_vm14, %v1757_v18, %v797_v44  ;;  %vm1125_vm2 = vcmp.ge.s32.totalorder %v259_v29, 16  ;;  %v404_v46 = vsel %vm336_vm1, %v1743_v12, %v1741_v11 }
 0x194   :  { %1523 = vst.msk [vmem:[%s2669_s2 + $0x1e8] sm:$0xff] %vm1461_vm0, %v1458_v43  ;;  %vm468_vm3 = vcmp.ge.s32.totalorder %v268_v38, 2  ;;  %v1061_v47 = vsel %vm993_vm15, %v1759_v19, %v929_v45  ;;  %vm1257_vm4 = vcmp.ge.s32.totalorder %v259_v29, 32  ;;  %vm600_vm5 = vcmp.ge.s32.totalorder %v268_v38, 3 }
 0x195   :  { %v536_v48 = vsel %vm468_vm3, %v1751_v15, %v404_v46  ;;  %v1193_v50 = vsel %vm1125_vm2, %v1761_v20, %v1061_v47  ;;  %vm1389_vm6 = vcmp.ge.s32.totalorder %v259_v29, 64  ;;  %vm732_vm7 = vcmp.ge.s32.totalorder %v268_v38, 4 }
 0x196   :  { %v668_v51 = vsel %vm600_vm5, %v1753_v16, %v536_v48  ;;  %v1325_v52 = vsel %vm1257_vm4, %v1763_v23, %v1193_v50  ;;  %vm864_vm8 = vcmp.ge.s32.totalorder %v268_v38, 5  ;;  %vm996_vm9 = vcmp.ge.s32.totalorder %v268_v38, 8 }
 0x197   :  { %v800_v53 = vsel %vm732_vm7, %v1755_v17, %v668_v51  ;;  %v1457_v54 = vsel %vm1389_vm6, %v1765_v24, %v1325_v52  ;;  %vm335_vm10 = vcmp.ge.s32.totalorder %v265_v49, 1  ;;  %vm467_vm11 = vcmp.ge.s32.totalorder %v265_v49, 2 }
 0x198   :  { %v932_v55 = vsel %vm864_vm8, %v1757_v18, %v800_v53  ;;  %1522 = vst.msk [vmem:[%s2669_s2 + $0x1e0] sm:$0xff] %vm1461_vm0, %v1457_v54  ;;  %vm1128_vm12 = vcmp.ge.s32.totalorder %v268_v38, 16  ;;  %v403_v57 = vsel %vm335_vm10, %v1743_v12, %v1741_v11  ;;  %vm1260_vm13 = vcmp.ge.s32.totalorder %v268_v38, 32 }
 0x199   :  { %v1064_v56 = vsel %vm996_vm9, %v1759_v19, %v932_v55  ;;  %v535_v59 = vsel %vm467_vm11, %v1751_v15, %v403_v57  ;;  %vm599_vm14 = vcmp.ge.s32.totalorder %v265_v49, 3  ;;  %vm1392_vm15 = vcmp.ge.s32.totalorder %v268_v38, 64 }
 0x19a   :  { %v1196_v58 = vsel %vm1128_vm12, %v1761_v20, %v1064_v56  ;;  %v667_v61 = vsel %vm599_vm14, %v1753_v16, %v535_v59  ;;  %vm731_vm1 = vcmp.ge.s32.totalorder %v265_v49, 4  ;;  %vm863_vm2 = vcmp.ge.s32.totalorder %v265_v49, 5 }
 0x19b   :  { %v1328_v60 = vsel %vm1260_vm13, %v1763_v23, %v1196_v58  ;;  %v799_v63 = vsel %vm731_vm1, %v1755_v17, %v667_v61  ;;  %vm995_vm3 = vcmp.ge.s32.totalorder %v265_v49, 8  ;;  %vm1127_vm4 = vcmp.ge.s32.totalorder %v265_v49, 16 }
 0x19c   :  { %v1460_v62 = vsel %vm1392_vm15, %v1765_v24, %v1328_v60  ;;  %v931_v11 = vsel %vm863_vm2, %v1757_v18, %v799_v63  ;;  %vm1259_vm5 = vcmp.ge.s32.totalorder %v265_v49, 32  ;;  %vm1391_vm6 = vcmp.ge.s32.totalorder %v265_v49, 64 }
 0x19d   :  { %1525 = vst.msk [vmem:[%s2669_s2 + $0x1f8] sm:$0xff] %vm1461_vm0, %v1460_v62  ;;  %v1063_v12 = vsel %vm995_vm3, %v1759_v19, %v931_v11 }
 0x19e   :  { %v1195_v15 = vsel %vm1127_vm4, %v1761_v20, %v1063_v12 }
 0x19f   :  { %v1327_v16 = vsel %vm1259_vm5, %v1763_v23, %v1195_v15 }
 0x1a0   :  { %v1459_v17 = vsel %vm1391_vm6, %v1765_v24, %v1327_v16 }
 0x1a1   :  { %1524 = vst.msk [vmem:[%s2669_s2 + $0x1f0] sm:$0xff] %vm1461_vm0, %v1459_v17 }

</bundles_post_ra>
